<compile_context>
chip_gen: v7x
topology: tpu7x:2x2x1
jax: 0.10.0
libtpu: 0.0.40
codegen_flags: <defaults>
</compile_context>

<pallas_src>
import functools
import math

import jax
import jax.numpy as jnp
from jax.experimental import pallas as pl
from jax.experimental.pallas import tpu as pltpu

EPS = 1e-5


# ---------------------------------------------------------------------------
# Compiler params / VMEM accounting
# ---------------------------------------------------------------------------
def _mosaic_params(est_bytes):
    try:
        cap = int(pltpu.get_tpu_info().vmem_capacity_bytes)
    except Exception:
        cap = 64 * 1024 * 1024  # conservative (v7x per-core)
    limit = int(min(max(est_bytes + (8 << 20), 32 << 20), (cap * 3) // 4))
    return pltpu.CompilerParams(
        dimension_semantics=("parallel",),
        vmem_limit_bytes=limit,
    )


# ---------------------------------------------------------------------------
# Layout plumbing (plain JAX): flatten padded activation so every 3x3 tap is a
# contiguous row-slab + static lane slice.
# ---------------------------------------------------------------------------
def _pack_strided(a_pad, stride, ho, wo):
    """a_pad: (N, Hp, Wp, C) zero-padded activation.
    Packs the stride x stride spatial parity into the lane dim and flattens to
    (N, rows, stride*stride*C).  Returns (a_flat, taps, g, rows_out) where
    taps = ((row_off, lane_off, ky, kx), ...), g is the per-output-row group
    width (>= wo, extra columns are discarded garbage), rows_out = ho * g."""
    n, hp, wp, c = a_pad.shape
    s = stride
    hp2 = -(-hp // s) * s
    wp2 = -(-wp // s) * s
    if (hp2, wp2) != (hp, wp):
        a_pad = jnp.pad(a_pad, ((0, 0), (0, hp2 - hp), (0, wp2 - wp), (0, 0)))
    g = wp2 // s
    rows_total = (hp2 // s) * g
    a_flat = a_pad.reshape(n, hp2 // s, s, g, s, c)
    a_flat = a_flat.transpose(0, 1, 3, 2, 4, 5).reshape(n, rows_total, s * s * c)
    rows_out = ho * g
    taps = []
    max_end = 0
    for ky in range(3):
        for kx in range(3):
            row_off = (ky // s) * g + (kx // s)
            lane_off = ((ky % s) * s + (kx % s)) * c
            taps.append((row_off, lane_off, ky, kx))
            max_end = max(max_end, row_off + rows_out)
    extra = max(0, max_end - rows_total)
    if extra:
        a_flat = jnp.pad(a_flat, ((0, 0), (0, extra), (0, 0)))
    return a_flat, tuple(taps), g, rows_out


# ---------------------------------------------------------------------------
# Pallas kernels (one image per grid step, all weights VMEM-resident)
# ---------------------------------------------------------------------------
def _conv_bn_relu_kernel(a_ref, w_ref, s2_ref, b2_ref, o_ref, *, taps, tap_c, rows):
    """o = relu(bn2(conv3x3(a))) : 9 dense tap matmuls with an f32 accumulator."""
    cout = w_ref.shape[-1]
    acc = jnp.zeros((rows, cout), jnp.float32)
    for row_off, lane_off, ky, kx in taps:
        lhs = a_ref[0, row_off:row_off + rows, lane_off:lane_off + tap_c]
        acc = acc + jnp.dot(lhs, w_ref[ky, kx], preferred_element_type=jnp.float32)
    o_ref[0] = jnp.maximum(acc * s2_ref[...] + b2_ref[...], 0.0).astype(o_ref.dtype)


def _conv_add_residual_kernel(h_ref, w_ref, r_ref, o_ref, *, taps, tap_c, rows):
    """o = conv3x3(hid) + x  (identity shortcut, residual pre-loaded into acc)."""
    acc = r_ref[0].astype(jnp.float32)
    for row_off, lane_off, ky, kx in taps:
        lhs = h_ref[0, row_off:row_off + rows, lane_off:lane_off + tap_c]
        acc = acc + jnp.dot(lhs, w_ref[ky, kx], preferred_element_type=jnp.float32)
    o_ref[0] = acc.astype(o_ref.dtype)


def _conv_add_shortcut_kernel(h_ref, w_ref, xs_ref, ws_ref, o_ref, *, taps, tap_c, rows):
    """o = conv3x3(hid) + dense 1x1 conv of the strided relu(bn1(x))."""
    acc = jnp.dot(xs_ref[0], ws_ref[...], preferred_element_type=jnp.float32)
    for row_off, lane_off, ky, kx in taps:
        lhs = h_ref[0, row_off:row_off + rows, lane_off:lane_off + tap_c]
        acc = acc + jnp.dot(lhs, w_ref[ky, kx], preferred_element_type=jnp.float32)
    o_ref[0] = acc.astype(o_ref.dtype)


# ---------------------------------------------------------------------------
# pallas_call wrappers
# ---------------------------------------------------------------------------
def _stage1_call(a_flat, w1t, s2, b2, taps, tap_c, rows):
    n, rows_total, k1 = a_flat.shape
    cout = w1t.shape[-1]
    est = (2 * (rows_total * k1 * 2 + rows * cout * 2)      # dbl-buffered act/out
           + w1t.size * 2 + rows * cout * 4 + 4 * cout * 4)  # weights + acc + bn
    kernel = functools.partial(_conv_bn_relu_kernel, taps=taps, tap_c=tap_c, rows=rows)
    return pl.pallas_call(
        kernel,
        out_shape=jax.ShapeDtypeStruct((n, rows, cout), jnp.bfloat16),
        grid=(n,),
        in_specs=[
            pl.BlockSpec((1, rows_total, k1), lambda i: (i, 0, 0)),
            pl.BlockSpec(w1t.shape, lambda i: (0, 0, 0, 0)),   # resident
            pl.BlockSpec((1, cout), lambda i: (0, 0)),          # resident
            pl.BlockSpec((1, cout), lambda i: (0, 0)),          # resident
        ],
        out_specs=pl.BlockSpec((1, rows, cout), lambda i: (i, 0, 0)),
        compiler_params=_mosaic_params(est),
    )(a_flat, w1t, s2, b2)


def _stage2_residual_call(h_flat, w2t, res, taps, tap_c, rows):
    n, rows_total, k2 = h_flat.shape
    cout = w2t.shape[-1]
    est = (2 * (rows_total * k2 * 2 + rows * cout * 4 + rows * cout * 4)
           + w2t.size * 2)
    kernel = functools.partial(_conv_add_residual_kernel, taps=taps, tap_c=tap_c, rows=rows)
    return pl.pallas_call(
        kernel,
        out_shape=jax.ShapeDtypeStruct((n, rows, cout), jnp.float32),
        grid=(n,),
        in_specs=[
            pl.BlockSpec((1, rows_total, k2), lambda i: (i, 0, 0)),
            pl.BlockSpec(w2t.shape, lambda i: (0, 0, 0, 0)),    # resident
            pl.BlockSpec((1, rows, cout), lambda i: (i, 0, 0)),
        ],
        out_specs=pl.BlockSpec((1, rows, cout), lambda i: (i, 0, 0)),
        compiler_params=_mosaic_params(est),
    )(h_flat, w2t, res)


def _stage2_shortcut_call(h_flat, w2t, xs, wst, taps, tap_c, rows):
    n, rows_total, k2 = h_flat.shape
    cout = w2t.shape[-1]
    cs = xs.shape[-1]
    est = (2 * (rows_total * k2 * 2 + rows * cs * 2 + rows * cout * 4)
           + w2t.size * 2 + wst.size * 2)
    kernel = functools.partial(_conv_add_shortcut_kernel, taps=taps, tap_c=tap_c, rows=rows)
    return pl.pallas_call(
        kernel,
        out_shape=jax.ShapeDtypeStruct((n, rows, cout), jnp.float32),
        grid=(n,),
        in_specs=[
            pl.BlockSpec((1, rows_total, k2), lambda i: (i, 0, 0)),
            pl.BlockSpec(w2t.shape, lambda i: (0, 0, 0, 0)),    # resident
            pl.BlockSpec((1, rows, cs), lambda i: (i, 0, 0)),
            pl.BlockSpec(wst.shape, lambda i: (0, 0)),           # resident
        ],
        out_specs=pl.BlockSpec((1, rows, cout), lambda i: (i, 0, 0)),
        compiler_params=_mosaic_params(est),
    )(h_flat, w2t, xs, wst)


# ---------------------------------------------------------------------------
# Forward pass (eval-mode semantics of BasicBlock)
# ---------------------------------------------------------------------------
@functools.partial(jax.jit, static_argnames=("stride",))
def basic_block_forward(x_nchw, params, stride):
    x = jnp.transpose(x_nchw, (0, 2, 3, 1)).astype(jnp.float32)   # NCHW -> NHWC
    n, h, w, cin = x.shape
    cout = params["w1"].shape[0]
    equal_in_out = cin == cout
    if equal_in_out:
        assert stride == 1, "equalInOut WRN blocks use stride 1"
    ho = (h - 1) // stride + 1
    wo = (w - 1) // stride + 1

    # Fold BN running stats into per-channel scale/shift (eval semantics).
    scale1 = params["gamma1"] / jnp.sqrt(params["var1"] + EPS)
    shift1 = params["beta1"] - params["mean1"] * scale1
    scale2 = params["gamma2"] / jnp.sqrt(params["var2"] + EPS)
    shift2 = params["beta2"] - params["mean2"] * scale2
    s2 = scale2.reshape(1, -1).astype(jnp.float32)
    b2 = shift2.reshape(1, -1).astype(jnp.float32)

    # a = relu(bn1(x)) fused by XLA into the NHWC relayout; exact zero padding.
    a = jnp.maximum(x * scale1 + shift1, 0.0).astype(jnp.bfloat16)   # (N,H,W,Cin)
    a_pad = jnp.pad(a, ((0, 0), (1, 1), (1, 1), (0, 0)))

    # ---- stage 1: hid = relu(bn2(conv1(a)))  (one pallas_call over images) ---
    a_flat, taps1, g1, rows1 = _pack_strided(a_pad, stride, ho, wo)
    # Dense (3,3,Cin,Cout) relayout is O(9*Cin*Cout) (the banded blow-up is gone).
    w1t = jnp.transpose(params["w1"], (2, 3, 1, 0)).astype(jnp.bfloat16)
    hid_flat = _stage1_call(a_flat, w1t, s2, b2, taps1, cin, rows1)

    # TODO(synk): F.dropout (dropRate > 0, training) not implemented; the block
    # is evaluated with dropRate=0.0 / eval mode, where dropout is a no-op.

    # ---- stage 2: out = conv2(hid) + shortcut  (one pallas_call over images) -
    hid = hid_flat.reshape(n, ho, g1, cout)[:, :, :wo, :]            # drop slab garbage
    hid_pad = jnp.pad(hid, ((0, 0), (1, 1), (1, 1), (0, 0)))
    h_flat, taps2, g2, rows2 = _pack_strided(hid_pad, 1, ho, wo)
    w2t = jnp.transpose(params["w2"], (2, 3, 1, 0)).astype(jnp.bfloat16)

    if equal_in_out:
        # Identity shortcut: raw x, laid out in the same (Ho*g2)-grouped frame.
        res = jnp.pad(x, ((0, 0), (0, 0), (0, g2 - wo), (0, 0)))
        res = res.reshape(n, rows2, cout)
        out_flat = _stage2_residual_call(h_flat, w2t, res, taps2, cout, rows2)
    else:
        # Strided 1x1 conv shortcut applied to relu(bn1(x)) (dense matmul).
        a_s = a[:, 0:(ho - 1) * stride + 1:stride,
                0:(wo - 1) * stride + 1:stride, :]                   # (N,Ho,Wo,Cin)
        a_s = jnp.pad(a_s, ((0, 0), (0, 0), (0, g2 - wo), (0, 0)))
        a_s = a_s.reshape(n, rows2, cin)
        wst = jnp.transpose(params["ws"][:, :, 0, 0], (1, 0)).astype(jnp.bfloat16)
        out_flat = _stage2_shortcut_call(h_flat, w2t, a_s, wst, taps2, cout, rows2)

    out = out_flat.reshape(n, ho, g2, cout)[:, :, :wo, :]
    return jnp.transpose(out, (0, 3, 1, 2))                          # NHWC -> NCHW


# ---------------------------------------------------------------------------
# Deterministic parameter init (shapes from the PyTorch __init__)
# ---------------------------------------------------------------------------
def init_params(key, in_planes, out_planes):
    ks = jax.random.split(key, 12)

    def conv_w(k, co, ci, ksz):
        nfan = ksz * ksz * co
        return jax.random.normal(k, (co, ci, ksz, ksz), jnp.float32) * math.sqrt(
            2.0 / nfan
        )

    params = dict(
        gamma1=jax.random.uniform(ks[0], (in_planes,), jnp.float32, 0.5, 1.5),
        beta1=0.1 * jax.random.normal(ks[1], (in_planes,), jnp.float32),
        mean1=0.1 * jax.random.normal(ks[2], (in_planes,), jnp.float32),
        var1=jax.random.uniform(ks[3], (in_planes,), jnp.float32, 0.5, 1.5),
        gamma2=jax.random.uniform(ks[4], (out_planes,), jnp.float32, 0.5, 1.5),
        beta2=0.1 * jax.random.normal(ks[5], (out_planes,), jnp.float32),
        mean2=0.1 * jax.random.normal(ks[6], (out_planes,), jnp.float32),
        var2=jax.random.uniform(ks[7], (out_planes,), jnp.float32, 0.5, 1.5),
        w1=conv_w(ks[8], out_planes, in_planes, 3),
        w2=conv_w(ks[9], out_planes, out_planes, 3),
    )
    if in_planes != out_planes:
        params["ws"] = conv_w(ks[10], out_planes, in_planes, 1)
    return params


# ---------------------------------------------------------------------------
# Pure-JAX reference (same eval-mode semantics) for verification
# ---------------------------------------------------------------------------
def reference_forward(x_nchw, p, stride):
    x = jnp.transpose(x_nchw, (0, 2, 3, 1))
    cin, cout = p["w1"].shape[1], p["w1"].shape[0]
    equal = cin == cout

    def bn(z, g, b, mn, v):
        return (z - mn) / jnp.sqrt(v + EPS) * g + b

    def conv(z, wt, s, pad):
        return jax.lax.conv_general_dilated(
            z,
            jnp.transpose(wt, (2, 3, 1, 0)),
            (s, s),
            [(pad, pad), (pad, pad)],
            dimension_numbers=("NHWC", "HWIO", "NHWC"),
            precision=jax.lax.Precision.HIGHEST,
        )

    a = jax.nn.relu(bn(x, p["gamma1"], p["beta1"], p["mean1"], p["var1"]))
    hh = conv(a, p["w1"], stride, 1)
    hh = jax.nn.relu(bn(hh, p["gamma2"], p["beta2"], p["mean2"], p["var2"]))
    o = conv(hh, p["w2"], 1, 1)
    res = x if equal else conv(a, p["ws"], stride, 0)
    return jnp.transpose(res + o, (0, 3, 1, 2))


def _check(out, ref, max_abs_tol, rel_rms_tol):
    diff = out - ref
    max_abs = float(jnp.max(jnp.abs(diff)))
    rel_rms = float(jnp.sqrt(jnp.mean(diff ** 2) / (jnp.mean(ref ** 2) + 1e-12)))
    assert max_abs < max_abs_tol, (max_abs, rel_rms)
    assert rel_rms < rel_rms_tol, (max_abs, rel_rms)


# ---------------------------------------------------------------------------
if __name__ == "__main__":
    key = jax.random.PRNGKey(0)
    kx1, kx2, kp1, kp2 = jax.random.split(key, 4)

    # Case 1: downsampling block (in_planes=4, out_planes=8, stride=2)
    x1 = jax.random.normal(kx1, (2, 4, 16, 16), jnp.float32)
    p1 = init_params(kp1, 4, 8)
    out1 = basic_block_forward(x1, p1, stride=2)
    jax.block_until_ready(out1)
    ref1 = reference_forward(x1, p1, 2)
    assert out1.shape == (2, 8, 8, 8), out1.shape
    # bf16 MXU inputs -> looser tolerances than a pure-f32 path.
    _check(out1, ref1, max_abs_tol=0.12, rel_rms_tol=2.5e-2)

    # Case 2: identity-shortcut block (in_planes=out_planes=8, stride=1)
    x2 = jax.random.normal(kx2, (2, 8, 16, 16), jnp.float32)
    p2 = init_params(kp2, 8, 8)
    out2 = basic_block_forward(x2, p2, stride=1)
    jax.block_until_ready(out2)
    ref2 = reference_forward(x2, p2, 1)
    assert out2.shape == (2, 8, 16, 16), out2.shape
    _check(out2, ref2, max_abs_tol=0.12, rel_rms_tol=2.5e-2)

    print("KERNEL_OK")
</pallas_src>

<mosaic_0001>
module attributes {stable_mosaic.version = 11 : i64} {
  func.func @_conv_bn_relu_kernel(%arg0: i32, %arg1: memref<1x82x16xbf16, #tpu.memory_space<vmem>>, %arg2: memref<3x3x4x8xbf16, #tpu.memory_space<vmem>>, %arg3: memref<1x8xf32, #tpu.memory_space<vmem>>, %arg4: memref<1x8xf32, #tpu.memory_space<vmem>>, %arg5: memref<1x72x8xbf16, #tpu.memory_space<vmem>>) attributes {dimension_semantics = [#tpu.dimension_semantics<parallel>], iteration_bounds = array<i64: 2>, scalar_prefetch = 0 : i64, scratch_operands = 0 : i64, tpu.core_type = #tpu.core_type<tc>, window_params = [{transform_indices = @transform_0, window_bounds = array<i64: 1, 82, 16>}, {pipeline_mode = #tpu.pipeline_mode<synchronous>, transform_indices = @transform_1, window_bounds = array<i64: 3, 3, 4, 8>}, {pipeline_mode = #tpu.pipeline_mode<synchronous>, transform_indices = @transform_2, window_bounds = array<i64: 1, 8>}, {pipeline_mode = #tpu.pipeline_mode<synchronous>, transform_indices = @transform_3, window_bounds = array<i64: 1, 8>}, {transform_indices = @transform_4, window_bounds = array<i64: 1, 72, 8>}]} {
    %cst = arith.constant 0.000000e+00 : f32
    %0 = vector.broadcast %cst : f32 to vector<72x8xf32>
    %c0 = arith.constant 0 : index
    %c0_0 = arith.constant 0 : index
    %c0_1 = arith.constant 0 : index
    %1 = vector.load %arg1[%c0, %c0_0, %c0_1] : memref<1x82x16xbf16, #tpu.memory_space<vmem>>, vector<1x72x4xbf16>
    %2 = vector.shape_cast %1 : vector<1x72x4xbf16> to vector<72x4xbf16>
    %c0_2 = arith.constant 0 : index
    %c0_3 = arith.constant 0 : index
    %c0_4 = arith.constant 0 : index
    %c0_5 = arith.constant 0 : index
    %3 = vector.load %arg2[%c0_2, %c0_3, %c0_4, %c0_5] : memref<3x3x4x8xbf16, #tpu.memory_space<vmem>>, vector<1x1x4x8xbf16>
    %4 = vector.shape_cast %3 : vector<1x1x4x8xbf16> to vector<4x8xbf16>
    %cst_6 = arith.constant dense<0.000000e+00> : vector<72x8xf32>
    %5 = tpu.matmul %2, %4, %cst_6 {dimension_numbers = #tpu.dot_dimension_numbers<[1], [0], [0], [1], [0, 0, 1, 1], [], []>} : vector<72x4xbf16>, vector<4x8xbf16>, vector<72x8xf32> -> vector<72x8xf32>
    %6 = arith.addf %0, %5 : vector<72x8xf32>
    %c0_7 = arith.constant 0 : index
    %c0_8 = arith.constant 0 : index
    %c4 = arith.constant 4 : index
    %7 = vector.load %arg1[%c0_7, %c0_8, %c4] : memref<1x82x16xbf16, #tpu.memory_space<vmem>>, vector<1x72x4xbf16>
    %8 = vector.shape_cast %7 : vector<1x72x4xbf16> to vector<72x4xbf16>
    %c0_9 = arith.constant 0 : index
    %c1 = arith.constant 1 : index
    %c0_10 = arith.constant 0 : index
    %c0_11 = arith.constant 0 : index
    %9 = vector.load %arg2[%c0_9, %c1, %c0_10, %c0_11] : memref<3x3x4x8xbf16, #tpu.memory_space<vmem>>, vector<1x1x4x8xbf16>
    %10 = vector.shape_cast %9 : vector<1x1x4x8xbf16> to vector<4x8xbf16>
    %cst_12 = arith.constant dense<0.000000e+00> : vector<72x8xf32>
    %11 = tpu.matmul %8, %10, %cst_12 {dimension_numbers = #tpu.dot_dimension_numbers<[1], [0], [0], [1], [0, 0, 1, 1], [], []>} : vector<72x4xbf16>, vector<4x8xbf16>, vector<72x8xf32> -> vector<72x8xf32>
    %12 = arith.addf %6, %11 : vector<72x8xf32>
    %c0_13 = arith.constant 0 : index
    %c1_14 = arith.constant 1 : index
    %c0_15 = arith.constant 0 : index
    %13 = vector.load %arg1[%c0_13, %c1_14, %c0_15] : memref<1x82x16xbf16, #tpu.memory_space<vmem>>, vector<1x72x4xbf16>
    %14 = vector.shape_cast %13 : vector<1x72x4xbf16> to vector<72x4xbf16>
    %c0_16 = arith.constant 0 : index
    %c2 = arith.constant 2 : index
    %c0_17 = arith.constant 0 : index
    %c0_18 = arith.constant 0 : index
    %15 = vector.load %arg2[%c0_16, %c2, %c0_17, %c0_18] : memref<3x3x4x8xbf16, #tpu.memory_space<vmem>>, vector<1x1x4x8xbf16>
    %16 = vector.shape_cast %15 : vector<1x1x4x8xbf16> to vector<4x8xbf16>
    %cst_19 = arith.constant dense<0.000000e+00> : vector<72x8xf32>
    %17 = tpu.matmul %14, %16, %cst_19 {dimension_numbers = #tpu.dot_dimension_numbers<[1], [0], [0], [1], [0, 0, 1, 1], [], []>} : vector<72x4xbf16>, vector<4x8xbf16>, vector<72x8xf32> -> vector<72x8xf32>
    %18 = arith.addf %12, %17 : vector<72x8xf32>
    %c0_20 = arith.constant 0 : index
    %c0_21 = arith.constant 0 : index
    %c8 = arith.constant 8 : index
    %19 = vector.load %arg1[%c0_20, %c0_21, %c8] : memref<1x82x16xbf16, #tpu.memory_space<vmem>>, vector<1x72x4xbf16>
    %20 = vector.shape_cast %19 : vector<1x72x4xbf16> to vector<72x4xbf16>
    %c1_22 = arith.constant 1 : index
    %c0_23 = arith.constant 0 : index
    %c0_24 = arith.constant 0 : index
    %c0_25 = arith.constant 0 : index
    %21 = vector.load %arg2[%c1_22, %c0_23, %c0_24, %c0_25] : memref<3x3x4x8xbf16, #tpu.memory_space<vmem>>, vector<1x1x4x8xbf16>
    %22 = vector.shape_cast %21 : vector<1x1x4x8xbf16> to vector<4x8xbf16>
    %cst_26 = arith.constant dense<0.000000e+00> : vector<72x8xf32>
    %23 = tpu.matmul %20, %22, %cst_26 {dimension_numbers = #tpu.dot_dimension_numbers<[1], [0], [0], [1], [0, 0, 1, 1], [], []>} : vector<72x4xbf16>, vector<4x8xbf16>, vector<72x8xf32> -> vector<72x8xf32>
    %24 = arith.addf %18, %23 : vector<72x8xf32>
    %c0_27 = arith.constant 0 : index
    %c0_28 = arith.constant 0 : index
    %c12 = arith.constant 12 : index
    %25 = vector.load %arg1[%c0_27, %c0_28, %c12] : memref<1x82x16xbf16, #tpu.memory_space<vmem>>, vector<1x72x4xbf16>
    %26 = vector.shape_cast %25 : vector<1x72x4xbf16> to vector<72x4xbf16>
    %c1_29 = arith.constant 1 : index
    %c1_30 = arith.constant 1 : index
    %c0_31 = arith.constant 0 : index
    %c0_32 = arith.constant 0 : index
    %27 = vector.load %arg2[%c1_29, %c1_30, %c0_31, %c0_32] : memref<3x3x4x8xbf16, #tpu.memory_space<vmem>>, vector<1x1x4x8xbf16>
    %28 = vector.shape_cast %27 : vector<1x1x4x8xbf16> to vector<4x8xbf16>
    %cst_33 = arith.constant dense<0.000000e+00> : vector<72x8xf32>
    %29 = tpu.matmul %26, %28, %cst_33 {dimension_numbers = #tpu.dot_dimension_numbers<[1], [0], [0], [1], [0, 0, 1, 1], [], []>} : vector<72x4xbf16>, vector<4x8xbf16>, vector<72x8xf32> -> vector<72x8xf32>
    %30 = arith.addf %24, %29 : vector<72x8xf32>
    %c0_34 = arith.constant 0 : index
    %c1_35 = arith.constant 1 : index
    %c8_36 = arith.constant 8 : index
    %31 = vector.load %arg1[%c0_34, %c1_35, %c8_36] : memref<1x82x16xbf16, #tpu.memory_space<vmem>>, vector<1x72x4xbf16>
    %32 = vector.shape_cast %31 : vector<1x72x4xbf16> to vector<72x4xbf16>
    %c1_37 = arith.constant 1 : index
    %c2_38 = arith.constant 2 : index
    %c0_39 = arith.constant 0 : index
    %c0_40 = arith.constant 0 : index
    %33 = vector.load %arg2[%c1_37, %c2_38, %c0_39, %c0_40] : memref<3x3x4x8xbf16, #tpu.memory_space<vmem>>, vector<1x1x4x8xbf16>
    %34 = vector.shape_cast %33 : vector<1x1x4x8xbf16> to vector<4x8xbf16>
    %cst_41 = arith.constant dense<0.000000e+00> : vector<72x8xf32>
    %35 = tpu.matmul %32, %34, %cst_41 {dimension_numbers = #tpu.dot_dimension_numbers<[1], [0], [0], [1], [0, 0, 1, 1], [], []>} : vector<72x4xbf16>, vector<4x8xbf16>, vector<72x8xf32> -> vector<72x8xf32>
    %36 = arith.addf %30, %35 : vector<72x8xf32>
    %c0_42 = arith.constant 0 : index
    %c9 = arith.constant 9 : index
    %c0_43 = arith.constant 0 : index
    %37 = vector.load %arg1[%c0_42, %c9, %c0_43] : memref<1x82x16xbf16, #tpu.memory_space<vmem>>, vector<1x72x4xbf16>
    %38 = vector.shape_cast %37 : vector<1x72x4xbf16> to vector<72x4xbf16>
    %c2_44 = arith.constant 2 : index
    %c0_45 = arith.constant 0 : index
    %c0_46 = arith.constant 0 : index
    %c0_47 = arith.constant 0 : index
    %39 = vector.load %arg2[%c2_44, %c0_45, %c0_46, %c0_47] : memref<3x3x4x8xbf16, #tpu.memory_space<vmem>>, vector<1x1x4x8xbf16>
    %40 = vector.shape_cast %39 : vector<1x1x4x8xbf16> to vector<4x8xbf16>
    %cst_48 = arith.constant dense<0.000000e+00> : vector<72x8xf32>
    %41 = tpu.matmul %38, %40, %cst_48 {dimension_numbers = #tpu.dot_dimension_numbers<[1], [0], [0], [1], [0, 0, 1, 1], [], []>} : vector<72x4xbf16>, vector<4x8xbf16>, vector<72x8xf32> -> vector<72x8xf32>
    %42 = arith.addf %36, %41 : vector<72x8xf32>
    %c0_49 = arith.constant 0 : index
    %c9_50 = arith.constant 9 : index
    %c4_51 = arith.constant 4 : index
    %43 = vector.load %arg1[%c0_49, %c9_50, %c4_51] : memref<1x82x16xbf16, #tpu.memory_space<vmem>>, vector<1x72x4xbf16>
    %44 = vector.shape_cast %43 : vector<1x72x4xbf16> to vector<72x4xbf16>
    %c2_52 = arith.constant 2 : index
    %c1_53 = arith.constant 1 : index
    %c0_54 = arith.constant 0 : index
    %c0_55 = arith.constant 0 : index
    %45 = vector.load %arg2[%c2_52, %c1_53, %c0_54, %c0_55] : memref<3x3x4x8xbf16, #tpu.memory_space<vmem>>, vector<1x1x4x8xbf16>
    %46 = vector.shape_cast %45 : vector<1x1x4x8xbf16> to vector<4x8xbf16>
    %cst_56 = arith.constant dense<0.000000e+00> : vector<72x8xf32>
    %47 = tpu.matmul %44, %46, %cst_56 {dimension_numbers = #tpu.dot_dimension_numbers<[1], [0], [0], [1], [0, 0, 1, 1], [], []>} : vector<72x4xbf16>, vector<4x8xbf16>, vector<72x8xf32> -> vector<72x8xf32>
    %48 = arith.addf %42, %47 : vector<72x8xf32>
    %c0_57 = arith.constant 0 : index
    %c10 = arith.constant 10 : index
    %c0_58 = arith.constant 0 : index
    %49 = vector.load %arg1[%c0_57, %c10, %c0_58] : memref<1x82x16xbf16, #tpu.memory_space<vmem>>, vector<1x72x4xbf16>
    %50 = vector.shape_cast %49 : vector<1x72x4xbf16> to vector<72x4xbf16>
    %c2_59 = arith.constant 2 : index
    %c2_60 = arith.constant 2 : index
    %c0_61 = arith.constant 0 : index
    %c0_62 = arith.constant 0 : index
    %51 = vector.load %arg2[%c2_59, %c2_60, %c0_61, %c0_62] : memref<3x3x4x8xbf16, #tpu.memory_space<vmem>>, vector<1x1x4x8xbf16>
    %52 = vector.shape_cast %51 : vector<1x1x4x8xbf16> to vector<4x8xbf16>
    %cst_63 = arith.constant dense<0.000000e+00> : vector<72x8xf32>
    %53 = tpu.matmul %50, %52, %cst_63 {dimension_numbers = #tpu.dot_dimension_numbers<[1], [0], [0], [1], [0, 0, 1, 1], [], []>} : vector<72x4xbf16>, vector<4x8xbf16>, vector<72x8xf32> -> vector<72x8xf32>
    %54 = arith.addf %48, %53 : vector<72x8xf32>
    %c0_64 = arith.constant 0 : index
    %c0_65 = arith.constant 0 : index
    %55 = vector.load %arg3[%c0_64, %c0_65] : memref<1x8xf32, #tpu.memory_space<vmem>>, vector<1x8xf32>
    %56 = vector.broadcast %55 : vector<1x8xf32> to vector<72x8xf32>
    %57 = arith.mulf %54, %56 : vector<72x8xf32>
    %c0_66 = arith.constant 0 : index
    %c0_67 = arith.constant 0 : index
    %58 = vector.load %arg4[%c0_66, %c0_67] : memref<1x8xf32, #tpu.memory_space<vmem>>, vector<1x8xf32>
    %59 = vector.broadcast %58 : vector<1x8xf32> to vector<72x8xf32>
    %60 = arith.addf %57, %59 : vector<72x8xf32>
    %cst_68 = arith.constant 0.000000e+00 : f32
    %61 = vector.broadcast %cst_68 : f32 to vector<72x8xf32>
    %62 = arith.maximumf %60, %61 : vector<72x8xf32>
    %63 = arith.truncf %62 : vector<72x8xf32> to vector<72x8xbf16>
    %c0_69 = arith.constant 0 : index
    %c0_70 = arith.constant 0 : index
    %c0_71 = arith.constant 0 : index
    %64 = vector.load %arg5[%c0_69, %c0_70, %c0_71] : memref<1x72x8xbf16, #tpu.memory_space<vmem>>, vector<1x72x8xbf16>
    %65 = vector.shape_cast %64 : vector<1x72x8xbf16> to vector<72x8xbf16>
    %66 = vector.shape_cast %63 : vector<72x8xbf16> to vector<1x72x8xbf16>
    tpu.vector_store %arg5[%c0_69, %c0_70, %c0_71], %66 {strides = array<i32>} : memref<1x72x8xbf16, #tpu.memory_space<vmem>>, vector<1x72x8xbf16>,
    return
  }
  func.func @transform_0(%arg0: i32) -> (i32, i32, i32) {
    %c0_i32 = arith.constant 0 : i32
    %c0_i32_0 = arith.constant 0 : i32
    %c0_i32_1 = arith.constant 0 : i32
    return %arg0, %c0_i32, %c0_i32_0 : i32, i32, i32
  }
  func.func @transform_1(%arg0: i32) -> (i32, i32, i32, i32) {
    %c0_i32 = arith.constant 0 : i32
    %c0_i32_0 = arith.constant 0 : i32
    %c0_i32_1 = arith.constant 0 : i32
    %c0_i32_2 = arith.constant 0 : i32
    %c0_i32_3 = arith.constant 0 : i32
    return %c0_i32, %c0_i32_0, %c0_i32_1, %c0_i32_2 : i32, i32, i32, i32
  }
  func.func @transform_2(%arg0: i32) -> (i32, i32) {
    %c0_i32 = arith.constant 0 : i32
    %c0_i32_0 = arith.constant 0 : i32
    %c0_i32_1 = arith.constant 0 : i32
    return %c0_i32, %c0_i32_0 : i32, i32
  }
  func.func @transform_3(%arg0: i32) -> (i32, i32) {
    %c0_i32 = arith.constant 0 : i32
    %c0_i32_0 = arith.constant 0 : i32
    %c0_i32_1 = arith.constant 0 : i32
    return %c0_i32, %c0_i32_0 : i32, i32
  }
  func.func @transform_4(%arg0: i32) -> (i32, i32, i32) {
    %c0_i32 = arith.constant 0 : i32
    %c0_i32_0 = arith.constant 0 : i32
    %c0_i32_1 = arith.constant 0 : i32
    return %arg0, %c0_i32, %c0_i32_0 : i32, i32, i32
  }
}

module attributes {stable_mosaic.version = 11 : i64} {
  func.func @_conv_add_shortcut_kernel(%arg0: i32, %arg1: memref<1x102x8xbf16, #tpu.memory_space<vmem>>, %arg2: memref<3x3x8x8xbf16, #tpu.memory_space<vmem>>, %arg3: memref<1x80x4xbf16, #tpu.memory_space<vmem>>, %arg4: memref<4x8xbf16, #tpu.memory_space<vmem>>, %arg5: memref<1x80x8xf32, #tpu.memory_space<vmem>>) attributes {dimension_semantics = [#tpu.dimension_semantics<parallel>], iteration_bounds = array<i64: 2>, scalar_prefetch = 0 : i64, scratch_operands = 0 : i64, tpu.core_type = #tpu.core_type<tc>, window_params = [{transform_indices = @transform_0, window_bounds = array<i64: 1, 102, 8>}, {pipeline_mode = #tpu.pipeline_mode<synchronous>, transform_indices = @transform_1, window_bounds = array<i64: 3, 3, 8, 8>}, {transform_indices = @transform_2, window_bounds = array<i64: 1, 80, 4>}, {pipeline_mode = #tpu.pipeline_mode<synchronous>, transform_indices = @transform_3, window_bounds = array<i64: 4, 8>}, {transform_indices = @transform_4, window_bounds = array<i64: 1, 80, 8>}]} {
    %c0 = arith.constant 0 : index
    %c0_0 = arith.constant 0 : index
    %c0_1 = arith.constant 0 : index
    %0 = vector.load %arg3[%c0, %c0_0, %c0_1] : memref<1x80x4xbf16, #tpu.memory_space<vmem>>, vector<1x80x4xbf16>
    %1 = vector.shape_cast %0 : vector<1x80x4xbf16> to vector<80x4xbf16>
    %c0_2 = arith.constant 0 : index
    %c0_3 = arith.constant 0 : index
    %2 = vector.load %arg4[%c0_2, %c0_3] : memref<4x8xbf16, #tpu.memory_space<vmem>>, vector<4x8xbf16>
    %cst = arith.constant dense<0.000000e+00> : vector<80x8xf32>
    %3 = tpu.matmul %1, %2, %cst {dimension_numbers = #tpu.dot_dimension_numbers<[1], [0], [0], [1], [0, 0, 1, 1], [], []>} : vector<80x4xbf16>, vector<4x8xbf16>, vector<80x8xf32> -> vector<80x8xf32>
    %c0_4 = arith.constant 0 : index
    %c0_5 = arith.constant 0 : index
    %c0_6 = arith.constant 0 : index
    %4 = vector.load %arg1[%c0_4, %c0_5, %c0_6] : memref<1x102x8xbf16, #tpu.memory_space<vmem>>, vector<1x80x8xbf16>
    %5 = vector.shape_cast %4 : vector<1x80x8xbf16> to vector<80x8xbf16>
    %c0_7 = arith.constant 0 : index
    %c0_8 = arith.constant 0 : index
    %c0_9 = arith.constant 0 : index
    %c0_10 = arith.constant 0 : index
    %6 = vector.load %arg2[%c0_7, %c0_8, %c0_9, %c0_10] : memref<3x3x8x8xbf16, #tpu.memory_space<vmem>>, vector<1x1x8x8xbf16>
    %7 = vector.shape_cast %6 : vector<1x1x8x8xbf16> to vector<8x8xbf16>
    %cst_11 = arith.constant dense<0.000000e+00> : vector<80x8xf32>
    %8 = tpu.matmul %5, %7, %cst_11 {dimension_numbers = #tpu.dot_dimension_numbers<[1], [0], [0], [1], [0, 0, 1, 1], [], []>} : vector<80x8xbf16>, vector<8x8xbf16>, vector<80x8xf32> -> vector<80x8xf32>
    %9 = arith.addf %3, %8 : vector<80x8xf32>
    %c0_12 = arith.constant 0 : index
    %c1 = arith.constant 1 : index
    %c0_13 = arith.constant 0 : index
    %10 = vector.load %arg1[%c0_12, %c1, %c0_13] : memref<1x102x8xbf16, #tpu.memory_space<vmem>>, vector<1x80x8xbf16>
    %11 = vector.shape_cast %10 : vector<1x80x8xbf16> to vector<80x8xbf16>
    %c0_14 = arith.constant 0 : index
    %c1_15 = arith.constant 1 : index
    %c0_16 = arith.constant 0 : index
    %c0_17 = arith.constant 0 : index
    %12 = vector.load %arg2[%c0_14, %c1_15, %c0_16, %c0_17] : memref<3x3x8x8xbf16, #tpu.memory_space<vmem>>, vector<1x1x8x8xbf16>
    %13 = vector.shape_cast %12 : vector<1x1x8x8xbf16> to vector<8x8xbf16>
    %cst_18 = arith.constant dense<0.000000e+00> : vector<80x8xf32>
    %14 = tpu.matmul %11, %13, %cst_18 {dimension_numbers = #tpu.dot_dimension_numbers<[1], [0], [0], [1], [0, 0, 1, 1], [], []>} : vector<80x8xbf16>, vector<8x8xbf16>, vector<80x8xf32> -> vector<80x8xf32>
    %15 = arith.addf %9, %14 : vector<80x8xf32>
    %c0_19 = arith.constant 0 : index
    %c2 = arith.constant 2 : index
    %c0_20 = arith.constant 0 : index
    %16 = vector.load %arg1[%c0_19, %c2, %c0_20] : memref<1x102x8xbf16, #tpu.memory_space<vmem>>, vector<1x80x8xbf16>
    %17 = vector.shape_cast %16 : vector<1x80x8xbf16> to vector<80x8xbf16>
    %c0_21 = arith.constant 0 : index
    %c2_22 = arith.constant 2 : index
    %c0_23 = arith.constant 0 : index
    %c0_24 = arith.constant 0 : index
    %18 = vector.load %arg2[%c0_21, %c2_22, %c0_23, %c0_24] : memref<3x3x8x8xbf16, #tpu.memory_space<vmem>>, vector<1x1x8x8xbf16>
    %19 = vector.shape_cast %18 : vector<1x1x8x8xbf16> to vector<8x8xbf16>
    %cst_25 = arith.constant dense<0.000000e+00> : vector<80x8xf32>
    %20 = tpu.matmul %17, %19, %cst_25 {dimension_numbers = #tpu.dot_dimension_numbers<[1], [0], [0], [1], [0, 0, 1, 1], [], []>} : vector<80x8xbf16>, vector<8x8xbf16>, vector<80x8xf32> -> vector<80x8xf32>
    %21 = arith.addf %15, %20 : vector<80x8xf32>
    %c0_26 = arith.constant 0 : index
    %c10 = arith.constant 10 : index
    %c0_27 = arith.constant 0 : index
    %22 = vector.load %arg1[%c0_26, %c10, %c0_27] : memref<1x102x8xbf16, #tpu.memory_space<vmem>>, vector<1x80x8xbf16>
    %23 = vector.shape_cast %22 : vector<1x80x8xbf16> to vector<80x8xbf16>
    %c1_28 = arith.constant 1 : index
    %c0_29 = arith.constant 0 : index
    %c0_30 = arith.constant 0 : index
    %c0_31 = arith.constant 0 : index
    %24 = vector.load %arg2[%c1_28, %c0_29, %c0_30, %c0_31] : memref<3x3x8x8xbf16, #tpu.memory_space<vmem>>, vector<1x1x8x8xbf16>
    %25 = vector.shape_cast %24 : vector<1x1x8x8xbf16> to vector<8x8xbf16>
    %cst_32 = arith.constant dense<0.000000e+00> : vector<80x8xf32>
    %26 = tpu.matmul %23, %25, %cst_32 {dimension_numbers = #tpu.dot_dimension_numbers<[1], [0], [0], [1], [0, 0, 1, 1], [], []>} : vector<80x8xbf16>, vector<8x8xbf16>, vector<80x8xf32> -> vector<80x8xf32>
    %27 = arith.addf %21, %26 : vector<80x8xf32>
    %c0_33 = arith.constant 0 : index
    %c11 = arith.constant 11 : index
    %c0_34 = arith.constant 0 : index
    %28 = vector.load %arg1[%c0_33, %c11, %c0_34] : memref<1x102x8xbf16, #tpu.memory_space<vmem>>, vector<1x80x8xbf16>
    %29 = vector.shape_cast %28 : vector<1x80x8xbf16> to vector<80x8xbf16>
    %c1_35 = arith.constant 1 : index
    %c1_36 = arith.constant 1 : index
    %c0_37 = arith.constant 0 : index
    %c0_38 = arith.constant 0 : index
    %30 = vector.load %arg2[%c1_35, %c1_36, %c0_37, %c0_38] : memref<3x3x8x8xbf16, #tpu.memory_space<vmem>>, vector<1x1x8x8xbf16>
    %31 = vector.shape_cast %30 : vector<1x1x8x8xbf16> to vector<8x8xbf16>
    %cst_39 = arith.constant dense<0.000000e+00> : vector<80x8xf32>
    %32 = tpu.matmul %29, %31, %cst_39 {dimension_numbers = #tpu.dot_dimension_numbers<[1], [0], [0], [1], [0, 0, 1, 1], [], []>} : vector<80x8xbf16>, vector<8x8xbf16>, vector<80x8xf32> -> vector<80x8xf32>
    %33 = arith.addf %27, %32 : vector<80x8xf32>
    %c0_40 = arith.constant 0 : index
    %c12 = arith.constant 12 : index
    %c0_41 = arith.constant 0 : index
    %34 = vector.load %arg1[%c0_40, %c12, %c0_41] : memref<1x102x8xbf16, #tpu.memory_space<vmem>>, vector<1x80x8xbf16>
    %35 = vector.shape_cast %34 : vector<1x80x8xbf16> to vector<80x8xbf16>
    %c1_42 = arith.constant 1 : index
    %c2_43 = arith.constant 2 : index
    %c0_44 = arith.constant 0 : index
    %c0_45 = arith.constant 0 : index
    %36 = vector.load %arg2[%c1_42, %c2_43, %c0_44, %c0_45] : memref<3x3x8x8xbf16, #tpu.memory_space<vmem>>, vector<1x1x8x8xbf16>
    %37 = vector.shape_cast %36 : vector<1x1x8x8xbf16> to vector<8x8xbf16>
    %cst_46 = arith.constant dense<0.000000e+00> : vector<80x8xf32>
    %38 = tpu.matmul %35, %37, %cst_46 {dimension_numbers = #tpu.dot_dimension_numbers<[1], [0], [0], [1], [0, 0, 1, 1], [], []>} : vector<80x8xbf16>, vector<8x8xbf16>, vector<80x8xf32> -> vector<80x8xf32>
    %39 = arith.addf %33, %38 : vector<80x8xf32>
    %c0_47 = arith.constant 0 : index
    %c20 = arith.constant 20 : index
    %c0_48 = arith.constant 0 : index
    %40 = vector.load %arg1[%c0_47, %c20, %c0_48] : memref<1x102x8xbf16, #tpu.memory_space<vmem>>, vector<1x80x8xbf16>
    %41 = vector.shape_cast %40 : vector<1x80x8xbf16> to vector<80x8xbf16>
    %c2_49 = arith.constant 2 : index
    %c0_50 = arith.constant 0 : index
    %c0_51 = arith.constant 0 : index
    %c0_52 = arith.constant 0 : index
    %42 = vector.load %arg2[%c2_49, %c0_50, %c0_51, %c0_52] : memref<3x3x8x8xbf16, #tpu.memory_space<vmem>>, vector<1x1x8x8xbf16>
    %43 = vector.shape_cast %42 : vector<1x1x8x8xbf16> to vector<8x8xbf16>
    %cst_53 = arith.constant dense<0.000000e+00> : vector<80x8xf32>
    %44 = tpu.matmul %41, %43, %cst_53 {dimension_numbers = #tpu.dot_dimension_numbers<[1], [0], [0], [1], [0, 0, 1, 1], [], []>} : vector<80x8xbf16>, vector<8x8xbf16>, vector<80x8xf32> -> vector<80x8xf32>
    %45 = arith.addf %39, %44 : vector<80x8xf32>
    %c0_54 = arith.constant 0 : index
    %c21 = arith.constant 21 : index
    %c0_55 = arith.constant 0 : index
    %46 = vector.load %arg1[%c0_54, %c21, %c0_55] : memref<1x102x8xbf16, #tpu.memory_space<vmem>>, vector<1x80x8xbf16>
    %47 = vector.shape_cast %46 : vector<1x80x8xbf16> to vector<80x8xbf16>
    %c2_56 = arith.constant 2 : index
    %c1_57 = arith.constant 1 : index
    %c0_58 = arith.constant 0 : index
    %c0_59 = arith.constant 0 : index
    %48 = vector.load %arg2[%c2_56, %c1_57, %c0_58, %c0_59] : memref<3x3x8x8xbf16, #tpu.memory_space<vmem>>, vector<1x1x8x8xbf16>
    %49 = vector.shape_cast %48 : vector<1x1x8x8xbf16> to vector<8x8xbf16>
    %cst_60 = arith.constant dense<0.000000e+00> : vector<80x8xf32>
    %50 = tpu.matmul %47, %49, %cst_60 {dimension_numbers = #tpu.dot_dimension_numbers<[1], [0], [0], [1], [0, 0, 1, 1], [], []>} : vector<80x8xbf16>, vector<8x8xbf16>, vector<80x8xf32> -> vector<80x8xf32>
    %51 = arith.addf %45, %50 : vector<80x8xf32>
    %c0_61 = arith.constant 0 : index
    %c22 = arith.constant 22 : index
    %c0_62 = arith.constant 0 : index
    %52 = vector.load %arg1[%c0_61, %c22, %c0_62] : memref<1x102x8xbf16, #tpu.memory_space<vmem>>, vector<1x80x8xbf16>
    %53 = vector.shape_cast %52 : vector<1x80x8xbf16> to vector<80x8xbf16>
    %c2_63 = arith.constant 2 : index
    %c2_64 = arith.constant 2 : index
    %c0_65 = arith.constant 0 : index
    %c0_66 = arith.constant 0 : index
    %54 = vector.load %arg2[%c2_63, %c2_64, %c0_65, %c0_66] : memref<3x3x8x8xbf16, #tpu.memory_space<vmem>>, vector<1x1x8x8xbf16>
    %55 = vector.shape_cast %54 : vector<1x1x8x8xbf16> to vector<8x8xbf16>
    %cst_67 = arith.constant dense<0.000000e+00> : vector<80x8xf32>
    %56 = tpu.matmul %53, %55, %cst_67 {dimension_numbers = #tpu.dot_dimension_numbers<[1], [0], [0], [1], [0, 0, 1, 1], [], []>} : vector<80x8xbf16>, vector<8x8xbf16>, vector<80x8xf32> -> vector<80x8xf32>
    %57 = arith.addf %51, %56 : vector<80x8xf32>
    %c0_68 = arith.constant 0 : index
    %c0_69 = arith.constant 0 : index
    %c0_70 = arith.constant 0 : index
    %58 = vector.load %arg5[%c0_68, %c0_69, %c0_70] : memref<1x80x8xf32, #tpu.memory_space<vmem>>, vector<1x80x8xf32>
    %59 = vector.shape_cast %58 : vector<1x80x8xf32> to vector<80x8xf32>
    %60 = vector.shape_cast %57 : vector<80x8xf32> to vector<1x80x8xf32>
    tpu.vector_store %arg5[%c0_68, %c0_69, %c0_70], %60 {strides = array<i32>} : memref<1x80x8xf32, #tpu.memory_space<vmem>>, vector<1x80x8xf32>,
    return
  }
  func.func @transform_0(%arg0: i32) -> (i32, i32, i32) {
    %c0_i32 = arith.constant 0 : i32
    %c0_i32_0 = arith.constant 0 : i32
    %c0_i32_1 = arith.constant 0 : i32
    return %arg0, %c0_i32, %c0_i32_0 : i32, i32, i32
  }
  func.func @transform_1(%arg0: i32) -> (i32, i32, i32, i32) {
    %c0_i32 = arith.constant 0 : i32
    %c0_i32_0 = arith.constant 0 : i32
    %c0_i32_1 = arith.constant 0 : i32
    %c0_i32_2 = arith.constant 0 : i32
    %c0_i32_3 = arith.constant 0 : i32
    return %c0_i32, %c0_i32_0, %c0_i32_1, %c0_i32_2 : i32, i32, i32, i32
  }
  func.func @transform_2(%arg0: i32) -> (i32, i32, i32) {
    %c0_i32 = arith.constant 0 : i32
    %c0_i32_0 = arith.constant 0 : i32
    %c0_i32_1 = arith.constant 0 : i32
    return %arg0, %c0_i32, %c0_i32_0 : i32, i32, i32
  }
  func.func @transform_3(%arg0: i32) -> (i32, i32) {
    %c0_i32 = arith.constant 0 : i32
    %c0_i32_0 = arith.constant 0 : i32
    %c0_i32_1 = arith.constant 0 : i32
    return %c0_i32, %c0_i32_0 : i32, i32
  }
  func.func @transform_4(%arg0: i32) -> (i32, i32, i32) {
    %c0_i32 = arith.constant 0 : i32
    %c0_i32_0 = arith.constant 0 : i32
    %c0_i32_1 = arith.constant 0 : i32
    return %arg0, %c0_i32, %c0_i32_0 : i32, i32, i32
  }
}

</mosaic_0001>

<bundles_post_ra>
// kernel: basic_block_forward.2
= control target key start
LH: loop header
LB: loop body
LE: loop exit
PB: predicated region body
PF: predicated region fallthrough
CT: control target
= control target key end

     0   :  { %s2049_s15 = smov 0   ;;  %s2459_s0 = inlined_call_operand.vmem [shape: bf16[2,82,16], index: 0, kind: input, shape index: {}]   ;;  %s2460_s1 = inlined_call_operand.vmem [shape: bf16[3,3,4,8], index: 1, kind: input, shape index: {}]   ;;  %s2461_s2 = inlined_call_operand.vmem [shape: f32[1,8], index: 2, kind: input, shape index: {}]   ;;  %s2462_s3 = inlined_call_operand.vmem [shape: f32[1,8], index: 3, kind: input, shape index: {}]   ;;  %s2463_s4 = inlined_call_operand.vmem [shape: bf16[2,72,8], index: 4, kind: output, shape index: {}]  }
   0x1 LB: > { %s1479_s16 = sadd.s32 4294967295, %s2017_s15   ;;  %p1483_p0 = scmp.ge.s32.totalorder %s2017_s15, 1  ;;  %s2017_s15 = sphi %s2049_s15, %s14_s15  }
   0x2   : > { %p162_p1 = scmp.lt.s32.totalorder %s2017_s15, 3 }
   0x4   : > { %p163_p2 = pnand %p1483_p0, %p162_p1 }
   0x5   : > { %p188_p3 = scmp.lt.s32.totalorder (!%p163_p2), %s1479_s16, 1  ;;  %vm260_vm0 = vcmask (!%p163_p2), 1041408   ;;  %v2019_v0 = vmov (!%p163_p2), 0.0   ;;  %v1519_v1 = vld [vmem:[%s2460_s1 + $0x8] sm:$0x3] (!%p163_p2)  ;;  %vm2020_vm1 = vmmov (!%p163_p2), 0  }
   0x6   : > { %166 = sbr.rel (%p163_p2) target bundleno = 532 (0x214), region = 36  ;;  %1719 = vmatprep.subr.bf16.mxu0 (!%p163_p2), %v2019_v0  ;;  %1631 = vmatprep.subr.bf16.mxu1 (!%p163_p2), %v2019_v0  ;;  %v2065_v2 = vsel (!%p163_p2), %vm260_vm0, %v1519_v1, 0  ;;  %v1486_v3 = vld [vmem:[%s2460_s1 + $0x2] sm:$0x3] (!%p163_p2)  ;;  %s2021_s25 = smov (!%p163_p2), 116   ;;  %vm244_vm3 = vcmask (!%p163_p2), 31744  }
   0x7   : > { %1721 = vmatprep.mubr.msk.bf16.mxu0 (!%p163_p2), %vm2020_vm1, %v2019_v0  ;;  %1633 = vmatprep.mubr.msk.bf16.mxu1 (!%p163_p2), %vm2020_vm1, %v2019_v0  ;;  %v262_v4 = vsel (!%p163_p2), %vm260_vm0, %v1486_v3, 0  ;;  %s2022_s26 = smov (!%p163_p2), 124   ;;  %vm463_vm2 = vsmask.f32 (!%p163_p2), 7424  ;;  %s2023_s27 = smov (!%p163_p2), 120   ;;  %vm1227_vm4 = vcmask (!%p163_p2), 1046528  }
   0x8   : > { %1720 = vmatpush3.bf16.msra.mxu0 (!%p163_p2), %v2065_v2  ;;  %1632 = vmatpush3.bf16.msra.mxu1 (!%p163_p2), %v262_v4  ;;  %vm1414_vm5 = vcmask (!%p163_p2), 60416  }
   0x9   : > { %1741 = vmatprep.subr.bf16.mxu0 (!%p163_p2), %v2019_v0  ;;  %1653 = vmatprep.subr.bf16.mxu1 (!%p163_p2), %v2019_v0 }
   0xd   : > { %s2465_s16 = smov (!%p188_p3, %s1479_s16), 1 }
   0xe   : > { %s1980_s21 = smul.u32 44, %s2465_s16 }
   0xf   : > { %s1981_s22 = smul.u32 36, %s2465_s16 }
  0x10   : > { %s2082_s24 = scalar_lea.vmem %s2459_s0, %s1980_s21 }
  0x11   : > { %v2085_v5 = vld [vmem:[%s2082_s24] sm:$0xff]   ;;  %v2088_v6 = vld [vmem:[%s2082_s24 + $0x8] sm:$0xff]   ;;  %v2097_v9 = vld [vmem:[%s2082_s24 + $0x10] sm:$0xff]  }
  0x12   : > { %715 = vrot.lane.b32.xlu0 %v2085_v5, %s2021_s25  ;;  %717 = vrot.lane.b32.xlu1 %v2088_v6, %s2021_s25  ;;  %v1998_v7 = vld [vmem:[%s2082_s24] sm:$0xff]   ;;  %v1999_v8 = vld [vmem:[%s2082_s24 + $0x8] sm:$0xff]  }
  0x13   : > { %v465_v10 = vshrl.u32 %v1998_v7, 16  ;;  %v467_v11 = vshll.u32 %v1998_v7, 16  ;;  %v472_v12 = vshll.u32 %v1999_v8, 16  ;;  %v2001_v13 = vld [vmem:[%s2082_s24 + $0x10] sm:$0xff]   ;;  %v476_v14 = vshrl.u32 %v1999_v8, 16  ;;  %v2003_v15 = vld [vmem:[%s2082_s24 + $0x18] sm:$0xff]  }
  0x14   : > { %v480_v18 = vshll.u32 %v2001_v13, 16  ;;  %v2106_v19 = vld [vmem:[%s2082_s24 + $0x18] sm:$0xff]   ;;  %v484_v20 = vshrl.u32 %v2001_v13, 16  ;;  %v488_v22 = vshll.u32 %v2003_v15, 16  ;;  %v492_v23 = vshrl.u32 %v2003_v15, 16  ;;  %v2115_v28 = vld [vmem:[%s2082_s24 + $0xc] sm:$0xff]  }
  0x15   : > { %v469_v16 = vrot.slane %v467_v11, 1  ;;  %v474_v17 = vrot.slane %v472_v12, 1  ;;  %v2004_v26 = vld [vmem:[%s2082_s24 + $0x20] sm:$0x1f]   ;;  %v2121_v30 = vld [vmem:[%s2082_s24 + $0x8] sm:$0xf] }
  0x16   : > { %234 = vrot.lane.b32.xlu0 %v2085_v5, %s2022_s26  ;;  %236 = vrot.lane.b32.xlu1 %v2088_v6, %s2022_s26  ;;  %v482_v25 = vrot.slane %v480_v18, 1  ;;  %v935_v27 = vld [vmem:[%s2082_s24 + $0x4] sm:$0xf]  ;;  %v496_v31 = vshll.u32 %v2004_v26, 16  ;;  %v490_v34 = vrot.slane %v488_v22, 1  ;;  %v2132_v36 = vld [vmem:[%s2082_s24 + $0x14] sm:$0xff]  }
  0x17   : > { %v470_v21 = vor.u32 %v469_v16, %v465_v10  ;;  %v478_v24 = vor.u32 %v476_v14, %v474_v17  ;;  %v1532_v32 = vcombine.low %v935_v27, %v2121_v30  ;;  %v2125_v33 = vld [vmem:[%s2082_s24 + $0x4] sm:$0xe]  ;;  %v2140_v38 = vld [vmem:[%s2082_s24 + $0x20] ss:$0 sps:$4 sm:$0xff]   ;;  %v980_v41 = vshll.u32 %v2115_v28, 16 }
  0x18   : > { %v1549_v35 = vcombine.low %v2125_v33, %v2121_v30  ;;  %v486_v39 = vor.u32 %v484_v20, %v482_v25  ;;  %v494_v42 = vor.u32 %v492_v23, %v490_v34  ;;  %v498_v43 = vrot.slane %v496_v31, 1  ;;  %v2144_v45 = vld [vmem:[%s2082_s24 + $0x1c] sm:$0xff]   ;;  %v2161_v56 = vld [vmem:[%s2082_s24 + $0x24] sm:$0x1f]   ;;  %v1525_v13 = vld [vmem:[%s2460_s1 + $0xa] sm:$0x3] }
  0x19   : > { %v2118_v29 = vsel %vm463_vm2, %v470_v21, %v474_v17  ;;  %v2137_v37 = vsel %vm463_vm2, %v478_v24, %v482_v25  ;;  %v975_v40 = vshll.u32 %v1532_v32, 16  ;;  %v973_v44 = vshrl.u32 %v1532_v32, 16  ;;  %v208_v16 = vld [vmem:[%s2460_s1] sm:$0x3]  ;;  %v1531_v24 = vld [vmem:[%s2460_s1 + $0xc] sm:$0x3] }
  0x1a   : > { %719 = vrot.lane.b32.xlu0 %v2097_v9, %s2021_s25  ;;  %238 = vrot.lane.b32.xlu1 %v2097_v9, %s2022_s26  ;;  %v500_v47 = vshrl.u32 %v2004_v26, 16  ;;  %v988_v48 = vshll.u32 %v2132_v36, 16  ;;  %v2152_v49 = vsel %vm463_vm2, %v486_v39, %v490_v34  ;;  %v982_v50 = vrot.slane %v980_v41, 1  ;;  %v1502_v39 = vld [vmem:[%s2460_s1 + $0x4] sm:$0x3] }
  0x1b   : > { %v977_v46 = vrot.slane %v975_v40, 1  ;;  %v984_v51 = vshrl.u32 %v2115_v28, 16  ;;  %v2156_v52 = vsel %vm463_vm2, %v494_v42, %v498_v43  ;;  %v992_v54 = vshrl.u32 %v2132_v36, 16 }
  0x1c   : > { %v996_v55 = vshll.u32 %v2144_v45, 16  ;;  %v2165_v57 = vor.u32 %v500_v47, %v498_v43  ;;  %v990_v58 = vrot.slane %v988_v48, 1  ;;  %v1000_v60 = vshrl.u32 %v2144_v45, 16 }
  0x1d   : > { %v978_v53 = vor.u32 %v977_v46, %v973_v44  ;;  %v986_v59 = vor.u32 %v984_v51, %v982_v50  ;;  %v1004_v1 = vshll.u32 %v2161_v56, 16  ;;  %v1008_v10 = vshrl.u32 %v2161_v56, 16 }
  0x1e   : > { %826 = vrot.lane.b32.xlu0 %v2118_v29, %s2023_s27  ;;  %240 = vrot.lane.b32.xlu1 %v2106_v19, %s2022_s26  ;;  %v994_v62 = vor.u32 %v992_v54, %v990_v58  ;;  %v998_v63 = vrot.slane %v996_v55, 1  ;;  %v852_v14 = vsel %vm260_vm0, %v1525_v13, 0  ;;  %v352_v17 = vsel %vm260_vm0, %v208_v16, 0  ;;  %v2412_v13 = vld [vmem:[%s2462_s3] ss:$0 sm:$0xff] }
  0x1f   : > { %v2171_v61 = vsel %vm463_vm2, %v978_v53, %v982_v50  ;;  %v2179_v3 = vsel %vm463_vm2, %v986_v59, %v990_v58  ;;  %v1006_v8 = vrot.slane %v1004_v1, 1  ;;  %v1027_v26 = vsel %vm260_vm0, %v1531_v24, 0 }
  0x20   : > { %v2182_v4 = vsel %vm463_vm2, %v994_v62, %v998_v63  ;;  %v1002_v7 = vor.u32 %v1000_v60, %v998_v63  ;;  %v519_v40 = vsel %vm260_vm0, %v1502_v39, 0  ;;  %v1229_v51 = vrot.slane %v2115_v28, 1 }
  0x21   : > { %v2196_v12 = vor.u32 %v1008_v10, %v1006_v8  ;;  %v1231_v30 = vrot.slane %v2132_v36, 1  ;;  %v1235_v55 = vrot.slane %v2161_v56, 1 }
  0x22   : > { %828 = vrot.lane.b32.xlu0 %v2137_v37, %s2023_s27  ;;  %242 = vrot.lane.b32.xlu1 %v2140_v38, %s2022_s26  ;;  %v2190_v11 = vsel %vm463_vm2, %v1002_v7, %v1006_v8 }
  0x23   : > { %v1232_v28 = vsel %vm1227_vm4, %v1229_v51, %v1231_v30 }
  0x26   : > { %830 = vrot.lane.b32.xlu0 %v2152_v49, %s2023_s27  ;;  %832 = vrot.lane.b32.xlu1 %v2156_v52, %s2023_s27 }
  0x2a   : > { %834 = vrot.lane.b32.xlu0 %v2165_v57, %s2023_s27  ;;  %1112 = vrot.lane.b32.xlu1 %v2171_v61, %s2022_s26 }
  0x2e   : > { %1114 = vrot.lane.b32.xlu0 %v2179_v3, %s2022_s26  ;;  %1116 = vrot.lane.b32.xlu1 %v2182_v4, %s2022_s26 }
  0x32   : > { %604 = vrot.lane.b32.xlu0 %v2085_v5, %s2023_s27  ;;  %1118 = vrot.lane.b32.xlu1 %v2190_v11, %s2022_s26 }
  0x36   : > { %606 = vrot.lane.b32.xlu0 %v2088_v6, %s2023_s27  ;;  %1120 = vrot.lane.b32.xlu1 %v2196_v12, %s2022_s26 }
  0x3a   : > { %608 = vrot.lane.b32.xlu0 %v2097_v9, %s2023_s27  ;;  %610 = vrot.lane.b32.xlu1 %v2106_v19, %s2023_s27 }
  0x3e   : > { %612 = vrot.lane.b32.xlu0 %v2140_v38, %s2023_s27  ;;  %721 = vrot.lane.b32.xlu1 %v2106_v19, %s2021_s25 }
  0x42   : > { %723 = vrot.lane.b32.xlu0 %v2140_v38, %s2021_s25  ;;  %s2422_s25 = scalar_lea.vmem %s2463_s4, %s1981_s22 }
  0x84   : > { %v716_v15 = vpop.permute.xlu0 %715  ;;  %v718_v20 = vpop.permute.xlu1 %717 }
  0x85   : > { %1722 = vmatmul.mubr.msk.bf16.vlgmr.msra.gmra.mrb[0].mxu0 %vm244_vm3, %v716_v15 }
  0x86   : > { %1742 = vmatpush3.bf16.msra.mxu0 %v852_v14  ;;  %1725 = vmatprep.mubr.msk.bf16.mxu0 %vm2020_vm1, %v2019_v0 }
  0x87   : > { %1763 = vmatprep.subr.bf16.mxu0 %v2019_v0 }
  0x88   : > { %v235_v18 = vpop.permute.xlu0 %234  ;;  %v237_v21 = vpop.permute.xlu1 %236 }
  0x89   : > { %1634 = vmatmul.mubr.msk.bf16.vlgmr.msra.gmra.mrb[0].mxu1 %vm244_vm3, %v235_v18 }
  0x8a   : > { %1654 = vmatpush3.bf16.msra.mxu1 %v352_v17  ;;  %1637 = vmatprep.mubr.msk.bf16.mxu1 %vm2020_vm1, %v2019_v0 }
  0x8b   : > { %1675 = vmatprep.subr.bf16.mxu1 %v2019_v0 }
  0x8c   : > { %v720_v22 = vpop.permute.xlu0 %719  ;;  %v239_v23 = vpop.permute.xlu1 %238 }
  0x8d   : > { %1726 = vmatmul.mubr.msk.bf16.gmra.mrb[4].mxu0 %vm244_vm3, %v718_v20 }
  0x8e   : > { %1729 = vmatprep.mubr.msk.bf16.mxu0 %vm2020_vm1, %v2019_v0 }
  0x90   : > { %v827_v25 = vpop.permute.xlu0 %826  ;;  %v241_v27 = vpop.permute.xlu1 %240 }
  0x91   : > { %1638 = vmatmul.mubr.msk.bf16.gmra.mrb[4].mxu1 %vm244_vm3, %v237_v21 }
  0x92   : > { %1641 = vmatprep.mubr.msk.bf16.mxu1 %vm2020_vm1, %v2019_v0 }
  0x94   : > { %v829_v31 = vpop.permute.xlu0 %828  ;;  %v243_v32 = vpop.permute.xlu1 %242 }
  0x95   : > { %1730 = vmatmul.mubr.msk.bf16.gmra.mrb[8].mxu0 %vm244_vm3, %v720_v22 }
  0x96   : > { %1743 = vmatprep.mubr.msk.bf16.mxu0 %vm2020_vm1, %v2019_v0 }
  0x98   : > { %v831_v34 = vpop.permute.xlu0 %830  ;;  %v833_v41 = vpop.permute.xlu1 %832 }
  0x99   : > { %1642 = vmatmul.mubr.msk.bf16.gmra.mrb[8].mxu1 %vm244_vm3, %v239_v23 }
  0x9a   : > { %1645 = vmatprep.mubr.msk.bf16.mxu1 %vm2020_vm1, %v2019_v0 }
  0x9c   : > { %v835_v42 = vpop.permute.xlu0 %834 }
  0x9d   : > { %1744 = vmatmul.mubr.msk.bf16.vlgmr.msra.gmra.mrb[0].mxu0 %vm244_vm3, %v827_v25 }
  0x9e   : > { %1764 = vmatpush3.bf16.msra.mxu0 %v1027_v26  ;;  %1747 = vmatprep.mubr.msk.bf16.mxu0 %vm2020_vm1, %v2019_v0 }
  0x9f   : > { %1785 = vmatprep.subr.bf16.mxu0 %v2019_v0 }
  0xa0   : > { %v1115_v43 = vpop.permute.xlu0 %1114 }
  0xa1   : > { %1646 = vmatmul.mubr.msk.bf16.gmra.mrb[12].mxu1 %vm244_vm3, %v241_v27 }
  0xa2   : > { %1649 = vmatprep.mubr.msk.bf16.mxu1 %vm2020_vm1, %v2019_v0 }
  0xa4   : > { %v605_v46 = vpop.permute.xlu0 %604 }
  0xa5   : > { %1748 = vmatmul.mubr.msk.bf16.gmra.mrb[4].mxu0 %vm244_vm3, %v829_v31 }
  0xa6   : > { %1751 = vmatprep.mubr.msk.bf16.mxu0 %vm2020_vm1, %v2019_v0 }
  0xa8   : > { %v607_v48 = vpop.permute.xlu0 %606 }
  0xa9   : > { %1650 = vmatmul.mubr.msk.bf16.gmra.mrb[16].mxu1 %vm244_vm3, %v243_v32 }
  0xaa   : > { %1655 = vmatprep.mubr.msk.bf16.mxu1 %vm2020_vm1, %v2019_v0 }
  0xac   : > { %v609_v50 = vpop.permute.xlu0 %608 }
  0xad   : > { %1752 = vmatmul.mubr.msk.bf16.gmra.mrb[8].mxu0 %vm244_vm3, %v831_v34 }
  0xae   : > { %1755 = vmatprep.mubr.msk.bf16.mxu0 %vm2020_vm1, %v2019_v0 }
  0xb0   : > { %v613_v33 = vpop.permute.xlu0 %612 }
  0xb1   : > { %1656 = vmatmul.mubr.msk.bf16.vlgmr.msra.gmra.mrb[0].mxu1 %vm244_vm3, %v2085_v5  ;;  %v1542_v5 = vld [vmem:[%s2460_s1 + $0xe] sm:$0x3] }
  0xb2   : > { %1676 = vmatpush3.bf16.msra.mxu1 %v519_v40  ;;  %1659 = vmatprep.mubr.msk.bf16.mxu1 %vm2020_vm1, %v2019_v0 }
  0xb3   : > { %1697 = vmatprep.subr.bf16.mxu1 %v2019_v0 }
  0xb5   : > { %1756 = vmatmul.mubr.msk.bf16.gmra.mrb[12].mxu0 %vm244_vm3, %v833_v41 }
  0xb6   : > { %1759 = vmatprep.mubr.msk.bf16.mxu0 %vm2020_vm1, %v2019_v0 }
  0xb9   : > { %1660 = vmatmul.mubr.msk.bf16.gmra.mrb[4].mxu1 %vm244_vm3, %v2088_v6  ;;  %v1138_v6 = vsel %vm260_vm0, %v1542_v5, 0 }
  0xba   : > { %1663 = vmatprep.mubr.msk.bf16.mxu1 %vm2020_vm1, %v2019_v0 }
  0xbd   : > { %1760 = vmatmul.mubr.msk.bf16.gmra.mrb[16].mxu0 %vm244_vm3, %v835_v42 }
  0xbe   : > { %1765 = vmatprep.mubr.msk.bf16.mxu0 %vm2020_vm1, %v2019_v0 }
  0xc1   : > { %1664 = vmatmul.mubr.msk.bf16.gmra.mrb[8].mxu1 %vm244_vm3, %v2097_v9  ;;  %v1513_v9 = vld [vmem:[%s2460_s1 + $0x6] sm:$0x3] }
  0xc2   : > { %1667 = vmatprep.mubr.msk.bf16.mxu1 %vm2020_vm1, %v2019_v0 }
  0xc5   : > { %1766 = vmatmul.mubr.msk.bf16.vlgmr.msra.gmra.mrb[0].mxu0 %vm244_vm3, %v2171_v61 }
  0xc6   : > { %1786 = vmatpush3.bf16.msra.mxu0 %v1138_v6  ;;  %1769 = vmatprep.mubr.msk.bf16.mxu0 %vm2020_vm1, %v2019_v0 }
  0xc7   : > { %1807 = vmatprep.subr.bf16.mxu0 %v2019_v0 }
  0xc9   : > { %1668 = vmatmul.mubr.msk.bf16.gmra.mrb[12].mxu1 %vm244_vm3, %v2106_v19  ;;  %v630_v19 = vsel %vm260_vm0, %v1513_v9, 0 }
  0xca   : > { %1671 = vmatprep.mubr.msk.bf16.mxu1 %vm2020_vm1, %v2019_v0 }
  0xcd   : > { %1770 = vmatmul.mubr.msk.bf16.gmra.mrb[4].mxu0 %vm244_vm3, %v2179_v3 }
  0xce   : > { %1773 = vmatprep.mubr.msk.bf16.mxu0 %vm2020_vm1, %v2019_v0 }
  0xd1   : > { %1672 = vmatmul.mubr.msk.bf16.gmra.mrb[16].mxu1 %vm244_vm3, %v2140_v38  ;;  %v1113_v38 = vpop.permute.xlu1 %1112 }
  0xd2   : > { %1677 = vmatprep.mubr.msk.bf16.mxu1 %vm2020_vm1, %v2019_v0 }
  0xd5   : > { %1774 = vmatmul.mubr.msk.bf16.gmra.mrb[8].mxu0 %vm244_vm3, %v2182_v4  ;;  %v1117_v44 = vpop.permute.xlu1 %1116 }
  0xd6   : > { %1777 = vmatprep.mubr.msk.bf16.mxu0 %vm2020_vm1, %v2019_v0 }
  0xd9   : > { %1678 = vmatmul.mubr.msk.bf16.vlgmr.msra.gmra.mrb[0].mxu1 %vm244_vm3, %v2118_v29  ;;  %v1548_v29 = vld [vmem:[%s2460_s1 + $0x10] sm:$0x3]  ;;  %v1119_v47 = vpop.permute.xlu1 %1118 }
  0xda   : > { %1698 = vmatpush3.bf16.msra.mxu1 %v630_v19  ;;  %1681 = vmatprep.mubr.msk.bf16.mxu1 %vm2020_vm1, %v2019_v0 }
  0xdb   : > { %1829 = vmatprep.subr.bf16.mxu1 %v2019_v0 }
  0xdd   : > { %1778 = vmatmul.mubr.msk.bf16.gmra.mrb[12].mxu0 %vm244_vm3, %v2190_v11 }
  0xde   : > { %1781 = vmatprep.mubr.msk.bf16.mxu0 %vm2020_vm1, %v2019_v0 }
  0xe1   : > { %1682 = vmatmul.mubr.msk.bf16.gmra.mrb[4].mxu1 %vm244_vm3, %v2137_v37  ;;  %v1253_v37 = vsel %vm260_vm0, %v1548_v29, 0 }
  0xe2   : > { %1685 = vmatprep.mubr.msk.bf16.mxu1 %vm2020_vm1, %v2019_v0 }
  0xe5   : > { %1782 = vmatmul.mubr.msk.bf16.gmra.mrb[16].mxu0 %vm244_vm3, %v2196_v12 }
  0xe6   : > { %1787 = vmatprep.mubr.msk.bf16.mxu0 %vm2020_vm1, %v2019_v0 }
  0xe9   : > { %1686 = vmatmul.mubr.msk.bf16.gmra.mrb[8].mxu1 %vm244_vm3, %v2152_v49  ;;  %v1121_v49 = vpop.permute.xlu1 %1120 }
  0xea   : > { %1689 = vmatprep.mubr.msk.bf16.mxu1 %vm2020_vm1, %v2019_v0 }
  0xed   : > { %1788 = vmatmul.mubr.msk.bf16.vlgmr.msra.gmra.mrb[0].mxu0 %vm244_vm3, %v1113_v38  ;;  %v611_v53 = vpop.permute.xlu1 %610 }
  0xee   : > { %1808 = vmatpush3.bf16.msra.mxu0 %v1253_v37  ;;  %1791 = vmatprep.mubr.msk.bf16.mxu0 %vm2020_vm1, %v2019_v0 }
  0xf1   : > { %1690 = vmatmul.mubr.msk.bf16.gmra.mrb[12].mxu1 %vm244_vm3, %v2156_v52  ;;  %v722_v36 = vpop.permute.xlu1 %721 }
  0xf2   : > { %1693 = vmatprep.mubr.msk.bf16.mxu1 %vm2020_vm1, %v2019_v0 }
  0xf5   : > { %1792 = vmatmul.mubr.msk.bf16.gmra.mrb[4].mxu0 %vm244_vm3, %v1115_v43 }
  0xf6   : > { %1795 = vmatprep.mubr.msk.bf16.mxu0 %vm2020_vm1, %v2019_v0 }
  0xf9   : > { %1694 = vmatmul.mubr.msk.bf16.gmra.mrb[16].mxu1 %vm244_vm3, %v2165_v57 }
  0xfa   : > { %1699 = vmatprep.mubr.msk.bf16.mxu1 %vm2020_vm1, %v2019_v0 }
  0xfd   : > { %1796 = vmatmul.mubr.msk.bf16.gmra.mrb[8].mxu0 %vm244_vm3, %v1117_v44 }
  0xfe   : > { %1799 = vmatprep.mubr.msk.bf16.mxu0 %vm2020_vm1, %v2019_v0 }
 0x101   : > { %1700 = vmatmul.mubr.msk.bf16.vlgmr.msra.gmra.mrb[0].mxu1 %vm244_vm3, %v605_v46 }
 0x102   : > { %1830 = vmatpush3.bf16.msra.mxu1 %v2065_v2  ;;  %1703 = vmatprep.mubr.msk.bf16.mxu1 %vm2020_vm1, %v2019_v0  ;;  %v1228_v2 = vrot.slane %v1549_v35, 1  ;;  %v1233_v35 = vrot.slane %v2144_v45, 1  ;;  %v724_v45 = vpop.permute.xlu0 %723 }
 0x104   : > { %v1230_v52 = vsel %vm1227_vm4, %v1228_v2, %v1229_v51  ;;  %v1234_v54 = vsel %vm1227_vm4, %v1231_v30, %v1233_v35  ;;  %v1236_v57 = vsel %vm1227_vm4, %v1233_v35, %v1235_v55 }
 0x105   : > { %1800 = vmatmul.mubr.msk.bf16.gmra.mrb[12].mxu0 %vm244_vm3, %v1119_v47 }
 0x106   : > { %1803 = vmatprep.mubr.msk.bf16.mxu0 %vm2020_vm1, %v2019_v0 }
 0x109   : > { %1704 = vmatmul.mubr.msk.bf16.gmra.mrb[4].mxu1 %vm244_vm3, %v607_v48 }
 0x10a   : > { %1707 = vmatprep.mubr.msk.bf16.mxu1 %vm2020_vm1, %v2019_v0 }
 0x10d   : > { %1804 = vmatmul.mubr.msk.bf16.gmra.mrb[16].mxu0 %vm244_vm3, %v1121_v49 }
 0x10e   : > { %1809 = vmatprep.mubr.msk.bf16.mxu0 %vm2020_vm1, %v2019_v0 }
 0x111   : > { %1708 = vmatmul.mubr.msk.bf16.gmra.mrb[8].mxu1 %vm244_vm3, %v609_v50 }
 0x112   : > { %1711 = vmatprep.mubr.msk.bf16.mxu1 %vm2020_vm1, %v2019_v0 }
 0x115   : > { %1810 = vmatmul.mubr.msk.bf16.vlgmr.msra.gmra.mrb[0].mxu0 %vm244_vm3, %v1230_v52 }
 0x116   : > { %1813 = vmatprep.mubr.msk.bf16.mxu0 %vm2020_vm1, %v2019_v0 }
 0x119   : > { %1712 = vmatmul.mubr.msk.bf16.gmra.mrb[12].mxu1 %vm244_vm3, %v611_v53 }
 0x11a   : > { %1715 = vmatprep.mubr.msk.bf16.mxu1 %vm2020_vm1, %v2019_v0 }
 0x11d   : > { %1814 = vmatmul.mubr.msk.bf16.gmra.mrb[4].mxu0 %vm244_vm3, %v1232_v28 }
 0x11e   : > { %1817 = vmatprep.mubr.msk.bf16.mxu0 %vm2020_vm1, %v2019_v0 }
 0x121   : > { %1716 = vmatmul.mubr.msk.bf16.gmra.mrb[16].mxu1 %vm244_vm3, %v613_v33 }
 0x122   : > { %1733 = vmatprep.mubr.msk.bf16.mxu1 %vm2020_vm1, %v2019_v0 }
 0x125   : > { %1818 = vmatmul.mubr.msk.bf16.gmra.mrb[8].mxu0 %vm244_vm3, %v1234_v54 }
 0x126   : > { %1821 = vmatprep.mubr.msk.bf16.mxu0 %vm2020_vm1, %v2019_v0 }
 0x129   : > { %1734 = vmatmul.mubr.msk.bf16.vlgmr.msra.gmra.mrb[12].mxu1 %vm244_vm3, %v722_v36 }
 0x12a   : > { %1737 = vmatprep.mubr.msk.bf16.mxu1 %vm2020_vm1, %v2019_v0 }
 0x12d   : > { %1822 = vmatmul.mubr.msk.bf16.gmra.mrb[12].mxu0 %vm244_vm3, %v1236_v57 }
 0x12e   : > { %1825 = vmatprep.mubr.msk.bf16.mxu0 %vm2020_vm1, %v2019_v0  ;;  %v2407_v0 = vld [vmem:[%s2461_s2] ss:$0 sm:$0xff] }
 0x131   : > { %1738 = vmatmul.mubr.msk.bf16.gmra.mrb[16].mxu1 %vm244_vm3, %v724_v45 }
 0x135   : > { %1826 = vmatmul.mubr.msk.bf16.gmra.mrb[16].mxu0 %vm244_vm3, %v1235_v55 }
 0x1d4   : > { %v666_v58 = vpop.f32.mrb[0].mxu1 }
 0x1d5   : > { %v1701_v59 = vpop.f32.mrb[1].mxu1 }
 0x1d6   : > { %v669_v56 = vpop.f32.mrb[2].mxu1 }
 0x1d7   : > { %v1702_v60 = vpop.f32.mrb[3].mxu1 }
 0x1dc   : > { %v674_v61 = vpop.f32.mrb[4].mxu1 }
 0x1dd   : > { %v1705_v62 = vpop.f32.mrb[5].mxu1 }
 0x1de   : > { %v677_v63 = vpop.f32.mrb[6].mxu1 }
 0x1df   : > { %v1706_v1 = vpop.f32.mrb[7].mxu1 }
 0x1e4   : > { %v682_v3 = vpop.f32.mrb[8].mxu1 }
 0x1e5   : > { %v1709_v4 = vpop.f32.mrb[9].mxu1 }
 0x1e6   : > { %v685_v7 = vpop.f32.mrb[10].mxu1 }
 0x1e7   : > { %v1710_v8 = vpop.f32.mrb[11].mxu1 }
 0x1e8   : > { %v1289_v10 = vpop.f32.mrb[0].mxu0 }
 0x1e9   : > { %v1831_v11 = vadd.f32 %v1289_v10, %v666_v58  ;;  %v1811_v12 = vpop.f32.mrb[1].mxu0 }
 0x1ea   : > { %v1292_v14 = vpop.f32.mrb[2].mxu0 }
 0x1eb   : > { %v1343_v15 = vmul.f32 %v1831_v11, %v2407_v0  ;;  %v1832_v16 = vadd.f32 %v1292_v14, %v669_v56  ;;  %v1812_v17 = vpop.f32.mrb[3].mxu0 }
 0x1ed   : > { %v1359_v18 = vadd.f32 %v2412_v13, %v1343_v15  ;;  %v1344_v20 = vmul.f32 %v1832_v16, %v2407_v0 }
 0x1ef   : > { %v1368_v21 = vmax.f32 %v1359_v18, 0.0  ;;  %v1360_v22 = vadd.f32 %v2412_v13, %v1344_v20 }
 0x1f0   : > { %v1297_v23 = vpop.f32.mrb[4].mxu0 }
 0x1f1   : > { %v1568_v24 = vpack.c.bf16 %v1368_v21, %v1368_v21  ;;  %v1369_v25 = vmax.f32 %v1360_v22, 0.0  ;;  %v1833_v26 = vadd.f32 %v1297_v23, %v674_v61  ;;  %v1815_v27 = vpop.f32.mrb[5].mxu0 }
 0x1f2   : > { %v1300_v31 = vpop.f32.mrb[6].mxu0 }
 0x1f3   : > { %1415 = vst.msk [vmem:[%s2422_s25] sm:$0xf] %vm1414_vm5, %v1568_v24  ;;  %v1569_v32 = vpack.c.bf16 %v1369_v25, %v1369_v25  ;;  %v1345_v34 = vmul.f32 %v1833_v26, %v2407_v0  ;;  %v1834_v39 = vadd.f32 %v1300_v31, %v677_v63  ;;  %v1816_v40 = vpop.f32.mrb[7].mxu0 }
 0x1f5   : > { %1416 = vst.msk [vmem:[%s2422_s25 + $0x4] sm:$0xf] %vm1414_vm5, %v1569_v32  ;;  %v1361_v41 = vadd.f32 %v2412_v13, %v1345_v34  ;;  %v1346_v42 = vmul.f32 %v1834_v39, %v2407_v0 }
 0x1f7   : > { %v1370_v5 = vmax.f32 %v1361_v41, 0.0  ;;  %v1362_v6 = vadd.f32 %v2412_v13, %v1346_v42 }
 0x1f8   : > { %v1305_v9 = vpop.f32.mrb[8].mxu0 }
 0x1f9   : > { %v1570_v19 = vpack.c.bf16 %v1370_v5, %v1370_v5  ;;  %v1371_v29 = vmax.f32 %v1362_v6, 0.0  ;;  %v1835_v38 = vadd.f32 %v1305_v9, %v682_v3  ;;  %v1819_v37 = vpop.f32.mrb[9].mxu0 }
 0x1fa   : > { %v1308_v43 = vpop.f32.mrb[10].mxu0 }
 0x1fb   : > { %1417 = vst.msk [vmem:[%s2422_s25 + $0x8] sm:$0xf] %vm1414_vm5, %v1570_v19  ;;  %v1571_v44 = vpack.c.bf16 %v1371_v29, %v1371_v29  ;;  %v1347_v46 = vmul.f32 %v1835_v38, %v2407_v0  ;;  %v1836_v47 = vadd.f32 %v1308_v43, %v685_v7  ;;  %v1820_v48 = vpop.f32.mrb[11].mxu0 }
 0x1fc   : > { %v801_v49 = vpop.f32.mrb[12].mxu1 }
 0x1fd   : > { %1418 = vst.msk [vmem:[%s2422_s25 + $0xc] sm:$0xf] %vm1414_vm5, %v1571_v44  ;;  %v1363_v2 = vadd.f32 %v2412_v13, %v1347_v46  ;;  %v1348_v50 = vmul.f32 %v1836_v47, %v2407_v0  ;;  %v1735_v51 = vpop.f32.mrb[13].mxu1 }
 0x1fe   : > { %v804_v52 = vpop.f32.mrb[14].mxu1 }
 0x1ff   : > { %v1372_v53 = vmax.f32 %v1363_v2, 0.0  ;;  %v1364_v30 = vadd.f32 %v2412_v13, %v1348_v50  ;;  %v1736_v28 = vpop.f32.mrb[15].mxu1 }
 0x200   : > { %v1313_v33 = vpop.f32.mrb[12].mxu0 }
 0x201   : > { %v1572_v35 = vpack.c.bf16 %v1372_v53, %v1372_v53  ;;  %v1373_v54 = vmax.f32 %v1364_v30, 0.0  ;;  %v1837_v36 = vadd.f32 %v1313_v33, %v801_v49  ;;  %v1823_v55 = vpop.f32.mrb[13].mxu0 }
 0x202   : > { %v1316_v57 = vpop.f32.mrb[14].mxu0 }
 0x203   : > { %1419 = vst.msk [vmem:[%s2422_s25 + $0x10] sm:$0xf] %vm1414_vm5, %v1572_v35  ;;  %v1573_v45 = vpack.c.bf16 %v1373_v54, %v1373_v54  ;;  %v1349_v58 = vmul.f32 %v1837_v36, %v2407_v0  ;;  %v1838_v59 = vadd.f32 %v1316_v57, %v804_v52  ;;  %v1824_v56 = vpop.f32.mrb[15].mxu0 }
 0x204   : > { %v809_v60 = vpop.f32.mrb[16].mxu1 }
 0x205   : > { %1420 = vst.msk [vmem:[%s2422_s25 + $0x14] sm:$0xf] %vm1414_vm5, %v1573_v45  ;;  %v1365_v61 = vadd.f32 %v2412_v13, %v1349_v58  ;;  %v1350_v62 = vmul.f32 %v1838_v59, %v2407_v0  ;;  %v1739_v63 = vpop.f32.mrb[17].mxu1 }
 0x206   : > { %v812_v1 = vpop.f32.mrb[18].mxu1 }
 0x207   : > { %v1374_v3 = vmax.f32 %v1365_v61, 0.0  ;;  %v1366_v4 = vadd.f32 %v2412_v13, %v1350_v62  ;;  %v1740_v7 = vpop.f32.mrb[19].mxu1 }
 0x208   : > { %v1321_v8 = vpop.f32.mrb[16].mxu0 }
 0x209   : > { %v1574_v10 = vpack.c.bf16 %v1374_v3, %v1374_v3  ;;  %v1375_v11 = vmax.f32 %v1366_v4, 0.0  ;;  %v1839_v12 = vadd.f32 %v1321_v8, %v809_v60  ;;  %v1827_v14 = vpop.f32.mrb[17].mxu0 }
 0x20a   : > { %v1324_v15 = vpop.f32.mrb[18].mxu0 }
 0x20b   : > { %1421 = vst.msk [vmem:[%s2422_s25 + $0x18] sm:$0xf] %vm1414_vm5, %v1574_v10  ;;  %v1575_v16 = vpack.c.bf16 %v1375_v11, %v1375_v11  ;;  %v1351_v17 = vmul.f32 %v1839_v12, %v2407_v0  ;;  %v1828_v18 = vpop.f32.mrb[19].mxu0 }
 0x20d   : > { %1422 = vst.msk [vmem:[%s2422_s25 + $0x1c] sm:$0xf] %vm1414_vm5, %v1575_v16  ;;  %v1367_v20 = vadd.f32 %v2412_v13, %v1351_v17 }
 0x20f   : > { %v1376_v21 = vmax.f32 %v1367_v20, 0.0 }
 0x211   : > { %v1576_v22 = vpack.c.bf16 %v1376_v21, %v1376_v21 }
 0x213   : > { %1423 = vst.msk [vmem:[%s2422_s25 + $0x20] sm:$0xf] %vm1414_vm5, %v1576_v22 }
 0x214 PF: > { %s14_s15 = sadd.s32 1, %s2017_s15  }
 0x215   : > { %p11_p4 = scmp.ge.s32.totalorder %s14_s15, 4  }
 0x217   :  { %13 = sbr.rel (!%p11_p4) target bundleno = 1 (0x1), region = 74 }

// kernel: basic_block_forward.3
= control target key start
LH: loop header
LB: loop body
LE: loop exit
PB: predicated region body
PF: predicated region fallthrough
CT: control target
= control target key end

     0   :  { %s2358_s15 = smov 0   ;;  %s2828_s0 = inlined_call_operand.vmem [shape: bf16[2,102,8], index: 0, kind: input, shape index: {}]   ;;  %s2829_s1 = inlined_call_operand.vmem [shape: bf16[3,3,8,8], index: 1, kind: input, shape index: {}]   ;;  %s2830_s2 = inlined_call_operand.vmem [shape: bf16[2,80,4], index: 2, kind: input, shape index: {}]   ;;  %s2831_s3 = inlined_call_operand.vmem [shape: bf16[4,8], index: 3, kind: input, shape index: {}]   ;;  %s2832_s4 = inlined_call_operand.vmem [shape: f32[2,80,8], index: 4, kind: output, shape index: {}]  }
   0x1 LB: > { %s1726_s16 = sadd.s32 4294967295, %s2329_s15   ;;  %p1730_p0 = scmp.ge.s32.totalorder %s2329_s15, 1  ;;  %s2329_s15 = sphi %s2358_s15, %s14_s15  }
   0x2   : > { %p172_p1 = scmp.lt.s32.totalorder %s2329_s15, 3 }
   0x4   : > { %p173_p2 = pnand %p1730_p0, %p172_p1 }
   0x5   : > { %v240_v0 = vld [vmem:[%s2829_s1] sm:$0xf] (!%p173_p2)  ;;  %vm282_vm0 = vcmask (!%p173_p2), 1043456   ;;  %p203_p3 = scmp.lt.s32.totalorder (!%p173_p2), %s1726_s16, 1  ;;  %v2331_v1 = vmov (!%p173_p2), 0.0   ;;  %vm2332_vm1 = vmmov (!%p173_p2), 0  }
   0x6   : > { %176 = sbr.rel (%p173_p2) target bundleno = 437 (0x1b5), region = 36  ;;  %1887 = vmatprep.subr.bf16.mxu1 (!%p173_p2), %v2331_v1  ;;  %v284_v2 = vsel (!%p173_p2), %vm282_vm0, %v240_v0, 0  ;;  %1889 = vmatprep.mubr.msk.bf16.mxu1 (!%p173_p2), %vm2332_vm1, %v2331_v1  ;;  %v1785_v3 = vld [vmem:[%s2829_s1 + $0x10] sm:$0xf] (!%p173_p2)  ;;  %v229_v5 = vld [vmem:[%s2831_s3] sm:$0x3] (!%p173_p2) }
   0x7   : > { %1888 = vmatpush3.bf16.msra.mxu1 (!%p173_p2), %v284_v2  ;;  %1997 = vmatprep.subr.bf16.mxu0 (!%p173_p2), %v2331_v1  ;;  %v1012_v4 = vsel (!%p173_p2), %vm282_vm0, %v1785_v3, 0  ;;  %vm400_vm2 = vcmask (!%p173_p2), 1041408   ;;  %vm266_vm3 = vcmask (!%p173_p2), 64512   ;;  %vm942_vm4 = vsmask.f32 (!%p173_p2), 6400 }
   0x8   : > { %1998 = vmatpush3.bf16.msra.mxu0 (!%p173_p2), %v1012_v4  ;;  %1909 = vmatprep.subr.bf16.mxu1 (!%p173_p2), %v2331_v1  ;;  %v402_v7 = vsel (!%p173_p2), %vm400_vm2, %v229_v5, 0  ;;  %v1792_v16 = vld [vmem:[%s2829_s1 + $0x14] sm:$0xf] (!%p173_p2)  ;;  %vm1103_vm5 = vcmask (!%p173_p2), 1045504   ;;  %v1754_v3 = vld [vmem:[%s2829_s1 + $0x4] sm:$0xf] (!%p173_p2) }
   0x9   : > { %1999 = vmatprep.mubr.msk.bf16.mxu0 (!%p173_p2), %vm2332_vm1, %v2331_v1  ;;  %2019 = vmatprep.subr.bf16.mxu0 (!%p173_p2), %v2331_v1  ;;  %v1131_v28 = vsel (!%p173_p2), %vm282_vm0, %v1792_v16, 0  ;;  %vm384_vm6 = vcmask (!%p173_p2), 31744   ;;  %v1799_v16 = vld [vmem:[%s2829_s1 + $0x18] sm:$0xf] (!%p173_p2)  ;;  %vm670_vm7 = vcmask (!%p173_p2), 1046528   ;;  %vm1536_vm8 = vcmask (!%p173_p2), 1044480  }
   0xa   : > { %vm518_vm9 = vsmask.f32 (!%p173_p2), 7424  ;;  %vm1375_vm10 = vsmask.f32 (!%p173_p2), 5376 }
   0xd   : > { %s2834_s16 = smov (!%p203_p3, %s1726_s16), 1 }
   0xe   : > { %s2277_s21 = smul.u32 52, %s2834_s16 }
   0xf   : > { %s2278_s29 = smul.u32 40, %s2834_s16 }
  0x10   : > { %s2391_s26 = scalar_lea.vmem %s2828_s0, %s2277_s21  ;;  %s2279_s21 = smul.u32 80, %s2834_s16 }
  0x11   : > { %v2290_v6 = vld [vmem:[%s2391_s26] sm:$0xff]   ;;  %v2396_v9 = vld [vmem:[%s2391_s26 + $0x8] sm:$0xf]  ;;  %v2403_v11 = vld [vmem:[%s2391_s26 + $0xc] sm:$0xff]   ;;  %s2438_s6 = scalar_lea.vmem %s2830_s2, %s2278_s29 }
  0x12   : > { %v783_v8 = vld [vmem:[%s2391_s26 + $0x4] sm:$0xe]  ;;  %1890 = vmatmul.mubr.msk.bf16.vlgmr.msra.gmra.mrb[0].mxu1 %vm266_vm3, %v2290_v6  ;;  %v952_v14 = vshrl.u32 %v2403_v11, 16  ;;  %v955_v15 = vshll.u32 %v2403_v11, 16  ;;  %v2416_v17 = vld [vmem:[%s2391_s26 + $0x14] sm:$0xff]   ;;  %v2293_v22 = vld [vmem:[%s2391_s26 + $0x8] sm:$0xff]   ;;  %s2803_s24 = scalar_lea.vmem %s2832_s4, %s2279_s21 }
  0x13   : > { %v2400_v10 = vcombine.low %v783_v8, %v2396_v9  ;;  %1893 = vmatprep.mubr.msk.bf16.mxu1 %vm2332_vm1, %v2331_v1  ;;  %1910 = vmatpush3.bf16.msra.mxu1 %v402_v7  ;;  %v961_v23 = vshrl.u32 %v2416_v17, 16  ;;  %v964_v24 = vshll.u32 %v2416_v17, 16  ;;  %v2422_v27 = vld [vmem:[%s2391_s26 + $0x1c] sm:$0xff]   ;;  %v2295_v35 = vld [vmem:[%s2391_s26 + $0x10] sm:$0xff]   ;;  %v2444_v39 = vld [vmem:[%s2391_s26 + $0x24] sm:$0xff]   ;;  %v579_v6 = vsel %vm282_vm0, %v1754_v3, 0 }
  0x14   : > { %1931 = vmatprep.subr.bf16.mxu1 %v2331_v1  ;;  %v954_v20 = vrot.slane %v952_v14, 1  ;;  %v957_v21 = vrot.slane %v955_v15, 2  ;;  %v970_v33 = vshrl.u32 %v2422_v27, 16  ;;  %v973_v34 = vshll.u32 %v2422_v27, 16  ;;  %v2297_v43 = vld [vmem:[%s2391_s26 + $0x18] sm:$0xff]   ;;  %v2464_v48 = vld [vmem:[%s2391_s26 + $0x20] sm:$0xff]  }
  0x15   : > { %v944_v12 = vshrl.u32 %v2400_v10, 16  ;;  %v947_v13 = vshll.u32 %v2400_v10, 16  ;;  %v963_v29 = vrot.slane %v961_v23, 1  ;;  %v966_v30 = vrot.slane %v964_v24, 2  ;;  %v2471_v52 = vld [vmem:[%s2391_s26 + $0x28] sm:$0xff]   ;;  %v2299_v53 = vld [vmem:[%s2391_s26 + $0x20] sm:$0xff]  }
  0x16   : > { %v958_v26 = vor.u32 %v957_v21, %v954_v20  ;;  %v972_v37 = vrot.slane %v970_v33, 1  ;;  %v975_v38 = vrot.slane %v973_v34, 2  ;;  %v979_v41 = vshrl.u32 %v2444_v39, 16  ;;  %v2456_v44 = vld [vmem:[%s2391_s26 + $0x2c] ss:$0 sps:$4 sm:$0x33]  }
  0x17   : > { %v946_v18 = vrot.slane %v944_v12, 1  ;;  %v949_v19 = vrot.slane %v947_v13, 2  ;;  %v967_v32 = vor.u32 %v966_v30, %v963_v29  ;;  %v982_v42 = vshll.u32 %v2444_v39, 16  ;;  %v2318_v56 = vld [vmem:[%s2391_s26 + $0x30] ss:$0 sps:$4 sm:$0x33]  }
  0x18   : > { %v976_v40 = vor.u32 %v975_v38, %v972_v37  ;;  %v981_v46 = vrot.slane %v979_v41, 1  ;;  %v988_v50 = vshrl.u32 %v2456_v44, 16  ;;  %v991_v51 = vshll.u32 %v2456_v44, 16  ;;  %v1097_v0 = vld [vmem:[%s2391_s26 + $0x4] sm:$0xc]  ;;  %v2513_v13 = vld [vmem:[%s2391_s26 + $0x10] sm:$0xff]  }
  0x19   : > { %v950_v25 = vor.u32 %v949_v19, %v946_v18  ;;  %v968_v36 = vsel %vm942_vm4, %v958_v26, %v967_v32  ;;  %v984_v47 = vrot.slane %v982_v42, 2  ;;  %v1262_v54 = vrot.slane %v2464_v48, 2  ;;  %v2301_v2 = vld [vmem:[%s2438_s6] sm:$0xff]   ;;  %v1530_v7 = vld [vmem:[%s2391_s26 + $0x8] sm:$0x8]  ;;  %v2522_v19 = vld [vmem:[%s2391_s26 + $0x18] sm:$0xff]  }
  0x1a   : > { %1894 = vmatmul.mubr.msk.bf16.gmra.mrb[4].mxu1 %vm266_vm3, %v2293_v22  ;;  %v977_v45 = vsel %vm942_vm4, %v967_v32, %v976_v40  ;;  %v1264_v55 = vrot.slane %v2471_v52, 2  ;;  %v990_v58 = vrot.slane %v988_v50, 1  ;;  %v993_v59 = vrot.slane %v991_v51, 2  ;;  %v2303_v18 = vld [vmem:[%s2438_s6 + $0x8] sm:$0xff]   ;;  %v2304_v34 = vld [vmem:[%s2438_s6 + $0x10] sm:$0xff]  }
  0x1b   : > { %v959_v31 = vsel %vm942_vm4, %v950_v25, %v958_v26  ;;  %1897 = vmatprep.mubr.msk.bf16.mxu1 %vm2332_vm1, %v2331_v1  ;;  %v985_v49 = vor.u32 %v984_v47, %v981_v46  ;;  %v1266_v61 = vrot.slane %v2318_v56, 2  ;;  %v1793_v5 = vcombine.low %v1097_v0, %v2396_v9  ;;  %v2510_v9 = vld [vmem:[%s2391_s26 + $0xc] sm:$0xf]  ;;  %v2573_v41 = vld [vmem:[%s2391_s26 + $0x4] sm:$0xf] }
  0x1c   : > { %2000 = vmatmul.mubr.msk.bf16.vlgmr.msra.gmra.mrb[0].mxu0 %vm266_vm3, %v959_v31  ;;  %v2481_v60 = vsel %vm1103_vm5, %v1262_v54, %v1264_v55  ;;  %v994_v63 = vor.u32 %v993_v59, %v990_v58  ;;  %v1105_v12 = vrot.slane %v2403_v11, 2  ;;  %v824_v14 = vrot.slane %v2400_v10, 1  ;;  %v2322_v46 = vld [vmem:[%s2391_s26 + $0x2c] ss:$0 sps:$4 sm:$0x11]   ;;  %v2306_v58 = vld [vmem:[%s2438_s6 + $0x20] sm:$0xff]  }
  0x1d   : > { %2020 = vmatpush3.bf16.msra.mxu0 %v1131_v28  ;;  %2003 = vmatprep.mubr.msk.bf16.mxu0 %vm2332_vm1, %v2331_v1  ;;  %v986_v57 = vsel %vm942_vm4, %v976_v40, %v985_v49  ;;  %v2488_v62 = vsel %vm1103_vm5, %v1264_v55, %v1266_v61  ;;  %v1104_v8 = vrot.slane %v1793_v5, 2  ;;  %v825_v15 = vrot.slane %v2403_v11, 1  ;;  %v477_v40 = vld [vmem:[%s2391_s26] sm:$0xf] }
  0x1e   : > { %2041 = vmatprep.subr.bf16.mxu0 %v2331_v1  ;;  %v995_v4 = vsel %vm942_vm4, %v985_v49, %v994_v63  ;;  %v1819_v20 = vcombine.low %v1530_v7, %v2510_v9  ;;  %v1538_v22 = vrot.slane %v2513_v13, 3  ;;  %v827_v10 = vrot.slane %v2416_v17, 1  ;;  %v2585_v51 = vld [vmem:[%s2391_s26 + $0x30] ss:$0 sps:$4 sm:$0x77]  }
  0x1f   : > { %v2526_v21 = vsel %vm670_vm7, %v824_v14, %v825_v15  ;;  %v1106_v11 = vsel %vm1103_vm5, %v1104_v8, %v1105_v12  ;;  %v1540_v24 = vrot.slane %v2522_v19, 3  ;;  %v1284_v25 = vsel %vm282_vm0, %v1799_v16, 0  ;;  %v1766_v7 = vld [vmem:[%s2829_s1 + $0x8] sm:$0xf] }
  0x20   : > { %v1537_v23 = vrot.slane %v1819_v20, 3  ;;  %v2534_v26 = vsel %vm670_vm7, %v825_v15, %v827_v10  ;;  %v829_v28 = vrot.slane %v2422_v27, 1  ;;  %v1107_v32 = vrot.slane %v2416_v17, 2 }
  0x21   : > { %v2542_v30 = vsel %vm1536_vm8, %v1538_v22, %v1540_v24  ;;  %v1542_v33 = vrot.slane %v2464_v48, 3  ;;  %v831_v37 = vrot.slane %v2444_v39, 1  ;;  %v1109_v17 = vrot.slane %v2422_v27, 2 }
  0x22   : > { %1898 = vmatmul.mubr.msk.bf16.gmra.mrb[8].mxu1 %vm266_vm3, %v2295_v35  ;;  %v2539_v29 = vsel %vm1536_vm8, %v1537_v23, %v1538_v22  ;;  %v2548_v31 = vsel %vm670_vm7, %v827_v10, %v829_v28  ;;  %v1544_v42 = vrot.slane %v2471_v52, 3  ;;  %v1755_v47 = vcombine.low %v477_v40, %v2573_v41  ;;  %v2633_v22 = vld [vmem:[%s2391_s26 + $0x18] sm:$0xff]  }
  0x23   : > { %1901 = vmatprep.mubr.msk.bf16.mxu1 %vm2332_vm1, %v2331_v1  ;;  %v2557_v35 = vsel %vm1536_vm8, %v1540_v24, %v1542_v33  ;;  %v2563_v38 = vsel %vm670_vm7, %v829_v28, %v831_v37  ;;  %v1110_v49 = vsel %vm1103_vm5, %v1107_v32, %v1109_v17  ;;  %v833_v50 = vrot.slane %v2322_v46, 1 }
  0x24   : > { %2004 = vmatmul.mubr.msk.bf16.gmra.mrb[4].mxu0 %vm266_vm3, %v968_v36  ;;  %v1108_v36 = vsel %vm1103_vm5, %v1105_v12, %v1107_v32  ;;  %v522_v55 = vshll.u32 %v1755_v47, 16  ;;  %v1111_v56 = vrot.slane %v2444_v39, 2  ;;  %v520_v61 = vshrl.u32 %v1755_v47, 16 }
  0x25   : > { %2007 = vmatprep.mubr.msk.bf16.mxu0 %vm2332_vm1, %v2331_v1  ;;  %v2588_v27 = vsel %vm670_vm7, %v831_v37, %v833_v50  ;;  %v1113_v5 = vrot.slane %v2456_v44, 2  ;;  %v1258_v10 = vrot.slane %v2513_v13, 2  ;;  %v1260_v37 = vrot.slane %v2522_v19, 2 }
  0x26   : > { %v524_v63 = vrot.slane %v522_v55, 1  ;;  %v547_v40 = vshrl.u32 %v2633_v22, 16 }
  0x27   : > { %v1114_v15 = vsel %vm1103_vm5, %v1111_v56, %v1113_v5 }
  0x28   : > { %v525_v39 = vor.u32 %v524_v63, %v520_v61  ;;  %v664_v63 = vld [vmem:[%s2391_s26] sm:$0xe] }
  0x2a   : > { %1902 = vmatmul.mubr.msk.bf16.gmra.mrb[12].mxu1 %vm266_vm3, %v2297_v43  ;;  %v2305_v43 = vld [vmem:[%s2438_s6 + $0x18] sm:$0xff]  }
  0x2b   : > { %1905 = vmatprep.mubr.msk.bf16.mxu1 %vm2332_vm1, %v2331_v1 }
  0x2c   : > { %2008 = vmatmul.mubr.msk.bf16.gmra.mrb[8].mxu0 %vm266_vm3, %v977_v45  ;;  %v2578_v45 = vsel %vm1536_vm8, %v1542_v33, %v1544_v42 }
  0x2d   : > { %2011 = vmatprep.mubr.msk.bf16.mxu0 %vm2332_vm1, %v2331_v1 }
  0x32   : > { %1906 = vmatmul.mubr.msk.bf16.gmra.mrb[16].mxu1 %vm266_vm3, %v2299_v53  ;;  %v2594_v53 = vld [vmem:[%s2391_s26 + $0x8] sm:$0xff]  }
  0x33   : > { %1911 = vmatprep.mubr.msk.bf16.mxu1 %vm2332_vm1, %v2331_v1  ;;  %v527_v0 = vshll.u32 %v2594_v53, 16  ;;  %v531_v12 = vshrl.u32 %v2594_v53, 16 }
  0x34   : > { %2012 = vmatmul.mubr.msk.bf16.gmra.mrb[12].mxu0 %vm266_vm3, %v986_v57  ;;  %v1546_v57 = vrot.slane %v2585_v51, 3 }
  0x35   : > { %2015 = vmatprep.mubr.msk.bf16.mxu0 %vm2332_vm1, %v2331_v1  ;;  %v529_v3 = vrot.slane %v527_v0, 1 }
  0x36   : > { %v2602_v59 = vsel %vm1536_vm8, %v1544_v42, %v1546_v57  ;;  %v1263_v57 = vsel %vm1103_vm5, %v1260_v37, %v1262_v54 }
  0x37   : > { %v530_v8 = vsel %vm518_vm9, %v525_v39, %v529_v3  ;;  %v533_v44 = vor.u32 %v531_v12, %v529_v3  ;;  %v672_v39 = vrot.slane %v2594_v53, 1 }
  0x3a   : > { %1912 = vmatmul.mubr.msk.bf16.vlgmr.msra.gmra.mrb[0].mxu1 %vm384_vm6, %v2301_v2  ;;  %v1112_v2 = vsel %vm1103_vm5, %v1109_v17, %v1111_v56 }
  0x3b   : > { %1915 = vmatprep.mubr.msk.bf16.mxu1 %vm2332_vm1, %v2331_v1  ;;  %1932 = vmatpush3.bf16.msra.mxu1 %v579_v6  ;;  %v1216_v6 = vld [vmem:[%s2391_s26 + $0x8] sm:$0xc] }
  0x3c   : > { %2016 = vmatmul.mubr.msk.bf16.gmra.mrb[16].mxu0 %vm266_vm3, %v995_v4  ;;  %1953 = vmatprep.subr.bf16.mxu1 %v2331_v1  ;;  %v2611_v4 = vld [vmem:[%s2391_s26 + $0x10] sm:$0xff]   ;;  %v2625_v16 = vcombine.low %v1216_v6, %v2510_v9  ;;  %v1388_v6 = vshll.u32 %v2513_v13, 16 }
  0x3d   : > { %2021 = vmatprep.mubr.msk.bf16.mxu0 %vm2332_vm1, %v2331_v1  ;;  %v535_v14 = vshll.u32 %v2611_v4, 16  ;;  %v539_v24 = vshrl.u32 %v2611_v4, 16 }
  0x3e   : > { %v1257_v9 = vrot.slane %v2625_v16, 2  ;;  %v1377_v3 = vshrl.u32 %v2625_v16, 16  ;;  %v1380_v5 = vshll.u32 %v2625_v16, 16 }
  0x3f   : > { %v537_v20 = vrot.slane %v535_v14, 1  ;;  %v1390_v14 = vrot.slane %v1388_v6, 3 }
  0x40   : > { %v1259_v28 = vsel %vm1103_vm5, %v1257_v9, %v1258_v10  ;;  %v1382_v12 = vrot.slane %v1380_v5, 3 }
  0x41   : > { %v538_v23 = vsel %vm518_vm9, %v533_v44, %v537_v20  ;;  %v541_v33 = vor.u32 %v539_v24, %v537_v20  ;;  %v1394_v44 = vshrl.u32 %v2522_v19, 16  ;;  %v1397_v20 = vshll.u32 %v2522_v19, 16 }
  0x42   : > { %1916 = vmatmul.mubr.msk.bf16.gmra.mrb[4].mxu1 %vm384_vm6, %v2303_v18  ;;  %v698_v18 = vsel %vm282_vm0, %v1766_v7, 0  ;;  %v676_v19 = vrot.slane %v2633_v22, 1 }
  0x43   : > { %1919 = vmatprep.mubr.msk.bf16.mxu1 %vm2332_vm1, %v2331_v1 }
  0x44   : > { %2022 = vmatmul.mubr.msk.bf16.vlgmr.msra.gmra.mrb[0].mxu0 %vm266_vm3, %v1106_v11  ;;  %v1811_v11 = vld [vmem:[%s2829_s1 + $0x1c] sm:$0xf] }
  0x45   : > { %2042 = vmatpush3.bf16.msra.mxu0 %v1284_v25  ;;  %2025 = vmatprep.mubr.msk.bf16.mxu0 %vm2332_vm1, %v2331_v1  ;;  %v543_v25 = vshll.u32 %v2633_v22, 16  ;;  %v1445_v32 = vsel %vm282_vm0, %v1811_v11, 0  ;;  %v1399_v11 = vrot.slane %v1397_v20, 3 }
  0x46   : > { %2063 = vmatprep.subr.bf16.mxu0 %v2331_v1 }
  0x4a   : > { %1920 = vmatmul.mubr.msk.bf16.gmra.mrb[8].mxu1 %vm384_vm6, %v2304_v34  ;;  %v545_v34 = vrot.slane %v543_v25, 1  ;;  %v1403_v25 = vshrl.u32 %v2464_v48, 16 }
  0x4b   : > { %1923 = vmatprep.mubr.msk.bf16.mxu1 %vm2332_vm1, %v2331_v1 }
  0x4c   : > { %2026 = vmatmul.mubr.msk.bf16.gmra.mrb[4].mxu0 %vm266_vm3, %v1108_v36  ;;  %v2653_v36 = vld [vmem:[%s2391_s26 + $0x20] sm:$0xff]   ;;  %v546_v17 = vsel %vm518_vm9, %v541_v33, %v545_v34  ;;  %v549_v46 = vor.u32 %v547_v40, %v545_v34  ;;  %v1405_v34 = vrot.slane %v1403_v25, 2  ;;  %v1415_v40 = vshll.u32 %v2471_v52, 16 }
  0x4d   : > { %2029 = vmatprep.mubr.msk.bf16.mxu0 %vm2332_vm1, %v2331_v1  ;;  %v551_v42 = vshll.u32 %v2653_v36, 16  ;;  %v555_v55 = vshrl.u32 %v2653_v36, 16  ;;  %v678_v22 = vrot.slane %v2653_v36, 1 }
  0x4f   : > { %v553_v47 = vrot.slane %v551_v42, 1  ;;  %v679_v42 = vsel %vm670_vm7, %v676_v19, %v678_v22 }
  0x51   : > { %v554_v50 = vsel %vm518_vm9, %v549_v46, %v553_v47 }
  0x52   : > { %1924 = vmatmul.mubr.msk.bf16.gmra.mrb[12].mxu1 %vm384_vm6, %v2305_v43  ;;  %v1261_v43 = vsel %vm1103_vm5, %v1258_v10, %v1260_v37 }
  0x53   : > { %1927 = vmatprep.mubr.msk.bf16.mxu1 %vm2332_vm1, %v2331_v1 }
  0x54   : > { %2030 = vmatmul.mubr.msk.bf16.gmra.mrb[8].mxu0 %vm266_vm3, %v1110_v49  ;;  %v2668_v49 = vld [vmem:[%s2391_s26 + $0x28] ss:$0 sps:$4 sm:$0x11]  }
  0x55   : > { %2033 = vmatprep.mubr.msk.bf16.mxu0 %vm2332_vm1, %v2331_v1  ;;  %v559_v56 = vshll.u32 %v2668_v49, 16  ;;  %v680_v36 = vrot.slane %v2668_v49, 1 }
  0x57   : > { %v561_v61 = vrot.slane %v559_v56, 1  ;;  %v681_v56 = vsel %vm670_vm7, %v678_v22, %v680_v36 }
  0x5a   : > { %1928 = vmatmul.mubr.msk.bf16.gmra.mrb[16].mxu1 %vm384_vm6, %v2306_v58  ;;  %v557_v58 = vor.u32 %v555_v55, %v553_v47  ;;  %v1417_v47 = vrot.slane %v1415_v40, 3  ;;  %v1424_v55 = vshll.u32 %v2585_v51, 16 }
  0x5b   : > { %1933 = vmatprep.mubr.msk.bf16.mxu1 %vm2332_vm1, %v2331_v1 }
  0x5c   : > { %2034 = vmatmul.mubr.msk.bf16.gmra.mrb[12].mxu0 %vm266_vm3, %v1112_v2  ;;  %v562_v0 = vsel %vm518_vm9, %v557_v58, %v561_v61  ;;  %v1767_v2 = vcombine.low %v664_v63, %v2573_v41  ;;  %v1385_v41 = vshrl.u32 %v2513_v13, 16  ;;  %v674_v13 = vrot.slane %v2611_v4, 1 }
  0x5d   : > { %2037 = vmatprep.mubr.msk.bf16.mxu0 %vm2332_vm1, %v2331_v1  ;;  %v1396_v4 = vrot.slane %v1394_v44, 2  ;;  %v1426_v61 = vrot.slane %v1424_v55, 3 }
  0x5e   : > { %v671_v54 = vrot.slane %v1767_v2, 1  ;;  %v1387_v53 = vrot.slane %v1385_v41, 2  ;;  %v675_v9 = vsel %vm670_vm7, %v672_v39, %v674_v13 }
  0x5f   : > { %v1400_v24 = vor.u32 %v1399_v11, %v1396_v4 }
  0x60   : > { %v673_v7 = vsel %vm670_vm7, %v671_v54, %v672_v39 }
  0x62   : > { %1934 = vmatmul.mubr.msk.bf16.vlgmr.msra.gmra.mrb[0].mxu1 %vm266_vm3, %v530_v8  ;;  %v1379_v8 = vrot.slane %v1377_v3, 2 }
  0x63   : > { %1937 = vmatprep.mubr.msk.bf16.mxu1 %vm2332_vm1, %v2331_v1  ;;  %1954 = vmatpush3.bf16.msra.mxu1 %v698_v18  ;;  %v1391_v18 = vor.u32 %v1390_v14, %v1387_v53 }
  0x64   : > { %2038 = vmatmul.mubr.msk.bf16.gmra.mrb[16].mxu0 %vm266_vm3, %v1114_v15  ;;  %1975 = vmatprep.subr.bf16.mxu1 %v2331_v1  ;;  %v1383_v16 = vor.u32 %v1382_v12, %v1379_v8 }
  0x65   : > { %2043 = vmatprep.mubr.msk.bf16.mxu0 %vm2332_vm1, %v2331_v1  ;;  %v1401_v33 = vsel %vm1375_vm10, %v1391_v18, %v1400_v24 }
  0x66   : > { %v1392_v10 = vsel %vm1375_vm10, %v1383_v16, %v1391_v18 }
  0x6a   : > { %1938 = vmatmul.mubr.msk.bf16.gmra.mrb[4].mxu1 %vm266_vm3, %v538_v23 }
  0x6b   : > { %1941 = vmatprep.mubr.msk.bf16.mxu1 %vm2332_vm1, %v2331_v1 }
  0x6c   : > { %2044 = vmatmul.mubr.msk.bf16.vlgmr.msra.gmra.mrb[0].mxu0 %vm266_vm3, %v1259_v28  ;;  %v1406_v28 = vshll.u32 %v2464_v48, 16  ;;  %v1412_v48 = vshrl.u32 %v2471_v52, 16  ;;  %v1421_v52 = vshrl.u32 %v2585_v51, 16 }
  0x6d   : > { %2064 = vmatpush3.bf16.msra.mxu0 %v1445_v32  ;;  %2047 = vmatprep.mubr.msk.bf16.mxu0 %vm2332_vm1, %v2331_v1  ;;  %v677_v32 = vsel %vm670_vm7, %v674_v13, %v676_v19 }
  0x6e   : > { %2085 = vmatprep.subr.bf16.mxu0 %v2331_v1  ;;  %v1408_v37 = vrot.slane %v1406_v28, 3  ;;  %v1414_v46 = vrot.slane %v1412_v48, 2  ;;  %v1423_v58 = vrot.slane %v1421_v52, 2 }
  0x70   : > { %v1427_v49 = vor.u32 %v1426_v61, %v1423_v58 }
  0x72   : > { %1942 = vmatmul.mubr.msk.bf16.gmra.mrb[8].mxu1 %vm266_vm3, %v546_v17  ;;  %v1409_v17 = vor.u32 %v1408_v37, %v1405_v34 }
  0x73   : > { %1945 = vmatprep.mubr.msk.bf16.mxu1 %vm2332_vm1, %v2331_v1 }
  0x74   : > { %2048 = vmatmul.mubr.msk.bf16.gmra.mrb[4].mxu0 %vm266_vm3, %v1261_v43  ;;  %v1410_v43 = vsel %vm1375_vm10, %v1400_v24, %v1409_v17 }
  0x75   : > { %2051 = vmatprep.mubr.msk.bf16.mxu0 %vm2332_vm1, %v2331_v1 }
  0x7a   : > { %1946 = vmatmul.mubr.msk.bf16.gmra.mrb[12].mxu1 %vm266_vm3, %v554_v50  ;;  %v1418_v50 = vor.u32 %v1417_v47, %v1414_v46 }
  0x7b   : > { %1949 = vmatprep.mubr.msk.bf16.mxu1 %vm2332_vm1, %v2331_v1 }
  0x7c   : > { %2052 = vmatmul.mubr.msk.bf16.gmra.mrb[8].mxu0 %vm266_vm3, %v1263_v57  ;;  %v1419_v57 = vsel %vm1375_vm10, %v1409_v17, %v1418_v50  ;;  %v1428_v63 = vsel %vm1375_vm10, %v1418_v50, %v1427_v49 }
  0x7d   : > { %2055 = vmatprep.mubr.msk.bf16.mxu0 %vm2332_vm1, %v2331_v1 }
  0x82   : > { %1950 = vmatmul.mubr.msk.bf16.gmra.mrb[16].mxu1 %vm266_vm3, %v562_v0 }
  0x83   : > { %1955 = vmatprep.mubr.msk.bf16.mxu1 %vm2332_vm1, %v2331_v1 }
  0x84   : > { %2056 = vmatmul.mubr.msk.bf16.gmra.mrb[12].mxu0 %vm266_vm3, %v2481_v60  ;;  %v1773_v60 = vld [vmem:[%s2829_s1 + $0xc] sm:$0xf] }
  0x85   : > { %2059 = vmatprep.mubr.msk.bf16.mxu0 %vm2332_vm1, %v2331_v1  ;;  %v851_v15 = vsel %vm282_vm0, %v1773_v60, 0 }
  0x8a   : > { %1956 = vmatmul.mubr.msk.bf16.vlgmr.msra.gmra.mrb[0].mxu1 %vm266_vm3, %v673_v7 }
  0x8b   : > { %1959 = vmatprep.mubr.msk.bf16.mxu1 %vm2332_vm1, %v2331_v1  ;;  %1976 = vmatpush3.bf16.msra.mxu1 %v851_v15 }
  0x8c   : > { %2060 = vmatmul.mubr.msk.bf16.gmra.mrb[16].mxu0 %vm266_vm3, %v2488_v62  ;;  %v1818_v62 = vld [vmem:[%s2829_s1 + $0x20] sm:$0xf] }
  0x8d   : > { %2065 = vmatprep.mubr.msk.bf16.mxu0 %vm2332_vm1, %v2331_v1  ;;  %v1564_v23 = vsel %vm282_vm0, %v1818_v62, 0 }
  0x92   : > { %1960 = vmatmul.mubr.msk.bf16.gmra.mrb[4].mxu1 %vm266_vm3, %v675_v9 }
  0x93   : > { %1963 = vmatprep.mubr.msk.bf16.mxu1 %vm2332_vm1, %v2331_v1 }
  0x94   : > { %2066 = vmatmul.mubr.msk.bf16.vlgmr.msra.gmra.mrb[0].mxu0 %vm266_vm3, %v1392_v10 }
  0x95   : > { %2086 = vmatpush3.bf16.msra.mxu0 %v1564_v23  ;;  %2069 = vmatprep.mubr.msk.bf16.mxu0 %vm2332_vm1, %v2331_v1 }
  0x9a   : > { %1964 = vmatmul.mubr.msk.bf16.gmra.mrb[8].mxu1 %vm266_vm3, %v677_v32 }
  0x9b   : > { %1967 = vmatprep.mubr.msk.bf16.mxu1 %vm2332_vm1, %v2331_v1 }
  0x9c   : > { %2070 = vmatmul.mubr.msk.bf16.gmra.mrb[4].mxu0 %vm266_vm3, %v1401_v33 }
  0x9d   : > { %2073 = vmatprep.mubr.msk.bf16.mxu0 %vm2332_vm1, %v2331_v1 }
  0xa2   : > { %1968 = vmatmul.mubr.msk.bf16.gmra.mrb[12].mxu1 %vm266_vm3, %v679_v42 }
  0xa3   : > { %1971 = vmatprep.mubr.msk.bf16.mxu1 %vm2332_vm1, %v2331_v1 }
  0xa4   : > { %2074 = vmatmul.mubr.msk.bf16.gmra.mrb[8].mxu0 %vm266_vm3, %v1410_v43 }
  0xa5   : > { %2077 = vmatprep.mubr.msk.bf16.mxu0 %vm2332_vm1, %v2331_v1 }
  0xaa   : > { %1972 = vmatmul.mubr.msk.bf16.gmra.mrb[16].mxu1 %vm266_vm3, %v681_v56 }
  0xab   : > { %1977 = vmatprep.mubr.msk.bf16.mxu1 %vm2332_vm1, %v2331_v1 }
  0xac   : > { %2078 = vmatmul.mubr.msk.bf16.gmra.mrb[12].mxu0 %vm266_vm3, %v1419_v57 }
  0xad   : > { %2081 = vmatprep.mubr.msk.bf16.mxu0 %vm2332_vm1, %v2331_v1 }
  0xb2   : > { %1978 = vmatmul.mubr.msk.bf16.vlgmr.msra.gmra.mrb[0].mxu1 %vm266_vm3, %v2526_v21 }
  0xb3   : > { %1981 = vmatprep.mubr.msk.bf16.mxu1 %vm2332_vm1, %v2331_v1 }
  0xb4   : > { %2082 = vmatmul.mubr.msk.bf16.gmra.mrb[16].mxu0 %vm266_vm3, %v1428_v63 }
  0xb5   : > { %2087 = vmatprep.mubr.msk.bf16.mxu0 %vm2332_vm1, %v2331_v1 }
  0xba   : > { %1982 = vmatmul.mubr.msk.bf16.gmra.mrb[4].mxu1 %vm266_vm3, %v2534_v26 }
  0xbb   : > { %1985 = vmatprep.mubr.msk.bf16.mxu1 %vm2332_vm1, %v2331_v1 }
  0xbc   : > { %2088 = vmatmul.mubr.msk.bf16.vlgmr.msra.gmra.mrb[0].mxu0 %vm266_vm3, %v2539_v29 }
  0xbd   : > { %2091 = vmatprep.mubr.msk.bf16.mxu0 %vm2332_vm1, %v2331_v1 }
  0xc2   : > { %1986 = vmatmul.mubr.msk.bf16.gmra.mrb[8].mxu1 %vm266_vm3, %v2548_v31 }
  0xc3   : > { %1989 = vmatprep.mubr.msk.bf16.mxu1 %vm2332_vm1, %v2331_v1 }
  0xc4   : > { %2092 = vmatmul.mubr.msk.bf16.gmra.mrb[4].mxu0 %vm266_vm3, %v2542_v30 }
  0xc5   : > { %2095 = vmatprep.mubr.msk.bf16.mxu0 %vm2332_vm1, %v2331_v1 }
  0xca   : > { %1990 = vmatmul.mubr.msk.bf16.gmra.mrb[12].mxu1 %vm266_vm3, %v2563_v38 }
  0xcb   : > { %1993 = vmatprep.mubr.msk.bf16.mxu1 %vm2332_vm1, %v2331_v1 }
  0xcc   : > { %2096 = vmatmul.mubr.msk.bf16.gmra.mrb[8].mxu0 %vm266_vm3, %v2557_v35 }
  0xcd   : > { %2099 = vmatprep.mubr.msk.bf16.mxu0 %vm2332_vm1, %v2331_v1 }
  0xd2   : > { %1994 = vmatmul.mubr.msk.bf16.gmra.mrb[16].mxu1 %vm266_vm3, %v2588_v27 }
  0xd4   : > { %2100 = vmatmul.mubr.msk.bf16.gmra.mrb[12].mxu0 %vm266_vm3, %v2578_v45 }
  0xd5   : > { %2103 = vmatprep.mubr.msk.bf16.mxu0 %vm2332_vm1, %v2331_v1 }
  0xdc   : > { %2104 = vmatmul.mubr.msk.bf16.gmra.mrb[16].mxu0 %vm266_vm3, %v2602_v59 }
 0x185   : > { %v887_v21 = vpop.f32.mrb[0].mxu1 }
 0x186   : > { %v1979_v26 = vpop.f32.mrb[1].mxu1 }
 0x187   : > { %v890_v29 = vpop.f32.mrb[2].mxu1 }
 0x188   : > { %v1980_v30 = vpop.f32.mrb[3].mxu1 }
 0x18d   : > { %v895_v31 = vpop.f32.mrb[4].mxu1 }
 0x18e   : > { %v1983_v38 = vpop.f32.mrb[5].mxu1 }
 0x18f   : > { %v1600_v35 = vpop.f32.mrb[0].mxu0  ;;  %v898_v51 = vpop.f32.mrb[6].mxu1 }
 0x190   : > { %v2107_v45 = vadd.f32 %v1600_v35, %v887_v21  ;;  %v2089_v1 = vpop.f32.mrb[1].mxu0  ;;  %v1984_v59 = vpop.f32.mrb[7].mxu1 }
 0x191   : > { %v1603_v27 = vpop.f32.mrb[2].mxu0 }
 0x192   : > { %1649 = vst.msk [vmem:[%s2803_s24] sm:$0xff] %vm266_vm3, %v2107_v45  ;;  %v2108_v0 = vadd.f32 %v1603_v27, %v890_v29  ;;  %v2090_v2 = vpop.f32.mrb[3].mxu0 }
 0x194   : > { %1650 = vst.msk [vmem:[%s2803_s24 + $0x8] sm:$0xff] %vm266_vm3, %v2108_v0 }
 0x195   : > { %v903_v54 = vpop.f32.mrb[8].mxu1 }
 0x196   : > { %v1987_v3 = vpop.f32.mrb[9].mxu1 }
 0x197   : > { %v1608_v39 = vpop.f32.mrb[4].mxu0  ;;  %v906_v6 = vpop.f32.mrb[10].mxu1 }
 0x198   : > { %v2109_v5 = vadd.f32 %v1608_v39, %v895_v31  ;;  %v2093_v41 = vpop.f32.mrb[5].mxu0  ;;  %v1988_v7 = vpop.f32.mrb[11].mxu1 }
 0x199   : > { %v1611_v60 = vpop.f32.mrb[6].mxu0 }
 0x19a   : > { %1651 = vst.msk [vmem:[%s2803_s24 + $0x10] sm:$0xff] %vm266_vm3, %v2109_v5  ;;  %v2110_v8 = vadd.f32 %v1611_v60, %v898_v51  ;;  %v2094_v12 = vpop.f32.mrb[7].mxu0 }
 0x19c   : > { %1652 = vst.msk [vmem:[%s2803_s24 + $0x18] sm:$0xff] %vm266_vm3, %v2110_v8 }
 0x19d   : > { %v911_v53 = vpop.f32.mrb[12].mxu1 }
 0x19e   : > { %v1991_v15 = vpop.f32.mrb[13].mxu1 }
 0x19f   : > { %v1616_v14 = vpop.f32.mrb[8].mxu0  ;;  %v914_v18 = vpop.f32.mrb[14].mxu1 }
 0x1a0   : > { %v2111_v13 = vadd.f32 %v1616_v14, %v903_v54  ;;  %v2097_v16 = vpop.f32.mrb[9].mxu0  ;;  %v1992_v20 = vpop.f32.mrb[15].mxu1 }
 0x1a1   : > { %v1619_v44 = vpop.f32.mrb[10].mxu0 }
 0x1a2   : > { %1653 = vst.msk [vmem:[%s2803_s24 + $0x20] sm:$0xff] %vm266_vm3, %v2111_v13  ;;  %v2112_v62 = vadd.f32 %v1619_v44, %v906_v6  ;;  %v2098_v9 = vpop.f32.mrb[11].mxu0 }
 0x1a4   : > { %1654 = vst.msk [vmem:[%s2803_s24 + $0x28] sm:$0xff] %vm266_vm3, %v2112_v62 }
 0x1a5   : > { %v919_v10 = vpop.f32.mrb[16].mxu1 }
 0x1a6   : > { %v1995_v11 = vpop.f32.mrb[17].mxu1 }
 0x1a7   : > { %v1624_v4 = vpop.f32.mrb[12].mxu0  ;;  %v922_v24 = vpop.f32.mrb[18].mxu1 }
 0x1a8   : > { %v2113_v23 = vadd.f32 %v1624_v4, %v911_v53  ;;  %v2101_v19 = vpop.f32.mrb[13].mxu0  ;;  %v1996_v28 = vpop.f32.mrb[19].mxu1 }
 0x1a9   : > { %v1627_v25 = vpop.f32.mrb[14].mxu0 }
 0x1aa   : > { %1655 = vst.msk [vmem:[%s2803_s24 + $0x30] sm:$0xff] %vm266_vm3, %v2113_v23  ;;  %v2114_v32 = vadd.f32 %v1627_v25, %v914_v18  ;;  %v2102_v33 = vpop.f32.mrb[15].mxu0 }
 0x1ac   : > { %1656 = vst.msk [vmem:[%s2803_s24 + $0x38] sm:$0xff] %vm266_vm3, %v2114_v32 }
 0x1af   : > { %v1632_v34 = vpop.f32.mrb[16].mxu0 }
 0x1b0   : > { %v2115_v37 = vadd.f32 %v1632_v34, %v919_v10  ;;  %v2105_v22 = vpop.f32.mrb[17].mxu0 }
 0x1b1   : > { %v1635_v17 = vpop.f32.mrb[18].mxu0 }
 0x1b2   : > { %1657 = vst.msk [vmem:[%s2803_s24 + $0x40] sm:$0xff] %vm266_vm3, %v2115_v37  ;;  %v2116_v48 = vadd.f32 %v1635_v17, %v922_v24  ;;  %v2106_v40 = vpop.f32.mrb[19].mxu0 }
 0x1b4   : > { %1658 = vst.msk [vmem:[%s2803_s24 + $0x48] sm:$0xff] %vm266_vm3, %v2116_v48 }
 0x1b5 PF: > { %s14_s15 = sadd.s32 1, %s2329_s15  }
 0x1b6   : > { %p11_p4 = scmp.ge.s32.totalorder %s14_s15, 4  }
 0x1b8   :  { %13 = sbr.rel (!%p11_p4) target bundleno = 1 (0x1), region = 77 }

</bundles_post_ra>
